<compile_context>
chip_gen: v7x
topology: tpu7x:2x2x1
jax: 0.10.0
libtpu: 0.0.40
codegen_flags: <defaults>
</compile_context>

<pallas_src>
import functools

import numpy as np
import jax
import jax.numpy as jnp
from jax.experimental import pallas as pl
from jax.experimental.pallas import tpu as pltpu

KSIZE = 7
PAD = 3


def _round_up(a, b):
    return -(-a // b) * b


def _reflect_index_map(n, pad):
    """PyTorch / np 'reflect' (edge-excluded) source index per padded pos."""
    idx = []
    for i in range(n + 2 * pad):
        q = i - pad
        if q < 0:
            q = -q
        elif q >= n:
            q = 2 * (n - 1) - q
        idx.append(q)
    return idx


def _build_conv_operators(weight, H, W):
    """Fold reflect padding + 7x7 conv weights into small matmul operators.

    A: (7, H, H)   A[kh] @ X selects reflect-padded row (i + kh) of X.
    B: (7, 2W, W)  [mean | max] (H, 2W) @ B[kh] applies the reflect-padded
                   horizontal taps of both input channels for row-offset kh.
    """
    ridx_h = _reflect_index_map(H, PAD)
    ridx_w = _reflect_index_map(W, PAD)

    A = np.zeros((KSIZE, H, H), np.float32)
    for kh in range(KSIZE):
        for i in range(H):
            A[kh, i, ridx_h[i + kh]] = 1.0

    sel = np.zeros((KSIZE, W, W), np.float32)          # sel[kw, w_in, w_out]
    for kw in range(KSIZE):
        for w_out in range(W):
            sel[kw, ridx_w[w_out + kw], w_out] = 1.0

    w2 = weight.reshape(2, KSIZE, KSIZE).astype(jnp.float32)   # (c, kh, kw)
    # B4[c, kh, w_in, w_out] = sum_kw w2[c, kh, kw] * sel[kw, w_in, w_out]
    B4 = jnp.einsum("chk,kij->chij", w2, jnp.asarray(sel))
    B = jnp.transpose(B4, (1, 0, 2, 3)).reshape(KSIZE, 2 * W, W)
    return jnp.asarray(A), B


def _vmem_capacity_bytes():
    try:
        cap = getattr(pltpu.get_tpu_info(), "vmem_capacity_bytes", None)
        if cap:
            return int(cap)
    except Exception:
        pass
    return 64 << 20    # conservative fallback (v7x-sized)


def _pick_tc(C, HW, itemsize, budget_bytes):
    """Largest channel tile (C itself, or a multiple of 8) within the budget."""
    row_bytes = _round_up(HW, 128) * itemsize
    if _round_up(C, 8) * row_bytes <= budget_bytes:
        return C
    cap_rows = max(1, budget_bytes // row_bytes)
    return int(min(C, max(8, (cap_rows // 8) * 8)))


def _fused_kernel(x_ref, b_ref, a_ref, bmat_ref, o_ref,
                  sum_ref, max_ref, plane_ref, *, C, tC, H, W, mask_tail):
    # x_ref: (1, tC, H*W) VMEM (lane-dense); b_ref: (1,) SMEM
    # a_ref: (7, H, H) VMEM; bmat_ref: (7, 2W, W) VMEM
    # o_ref: (1, H, W); sum_ref/max_ref: (1, H*W) f32; plane_ref: (H, 2W) f32
    k = pl.program_id(1)
    HW = H * W

    @pl.when(k == 0)
    def _init():
        sum_ref[...] = jnp.zeros_like(sum_ref)
        max_ref[...] = jnp.full_like(max_ref, -jnp.inf)

    xb = x_ref[0]                                        # (tC, HW), native dtype
    if mask_tail:
        # Remainder block: channels >= C carry unspecified data -> mask them.
        ch = jax.lax.broadcasted_iota(jnp.int32, (tC, 1), 0) + k * tC
        valid = ch < C
        xs = jnp.where(valid, xb, jnp.zeros((), xb.dtype))
        xm = jnp.where(valid, xb, jnp.array(-jnp.inf, xb.dtype))
    else:
        xs = xb
        xm = xb
    # No full-block f32 upcast temp: sum accumulates in f32, max in native dtype.
    sum_ref[...] = sum_ref[...] + jnp.sum(xs, axis=0, keepdims=True,
                                          dtype=jnp.float32)
    max_ref[...] = jnp.maximum(
        max_ref[...], jnp.max(xm, axis=0, keepdims=True).astype(jnp.float32))

    @pl.when(k == pl.num_programs(1) - 1)
    def _finalize():
        mean = sum_ref[...] * (1.0 / C)                  # (1, HW)
        mx = max_ref[...]                                # (1, HW)
        # Assemble the two reduced planes side by side: cols [0,W)=mean, [W,2W)=max.
        for h in range(H):
            plane_ref[h:h + 1, 0:W] = mean[:, h * W:(h + 1) * W]
            plane_ref[h:h + 1, W:2 * W] = mx[:, h * W:(h + 1) * W]
        plane = plane_ref[...]                           # (H, 2W) f32
        acc = jnp.full((H, W), b_ref[0], jnp.float32)
        for kh in range(KSIZE):
            m = jnp.dot(plane, bmat_ref[kh],
                        precision=jax.lax.Precision.HIGHEST,
                        preferred_element_type=jnp.float32)          # (H, W)
            acc = acc + jnp.dot(a_ref[kh], m,
                                precision=jax.lax.Precision.HIGHEST,
                                preferred_element_type=jnp.float32)  # (H, W)
        o_ref[0] = acc.astype(o_ref.dtype)


def spatial_attention_cga(x, weight, bias, *, tc=None):
    """x: (N, C, H, W), weight: (1, 2, 7, 7), bias: (1,) -> (N, 1, H, W)."""
    N, C, H, W = x.shape
    assert H > PAD and W > PAD, "reflect padding (pad=3) requires H, W >= 4"
    HW = H * W
    itemsize = jnp.dtype(x.dtype).itemsize

    vmem_cap = _vmem_capacity_bytes()                    # 128 MiB v5e/v6e, 64 MiB v7x
    budget = vmem_cap // 8                               # per x block (x2 buffered)
    tC = _pick_tc(C, HW, itemsize, budget) if tc is None else int(tc)
    assert tC == C or tC % 8 == 0, "channel tile must equal C or be a multiple of 8"
    nC = -(-C // tC)
    mask_tail = (C % tC) != 0

    x_flat = x.reshape(N, C, HW)                         # lane-dense last dim (free reshape)
    b_flat = bias.reshape(-1).astype(jnp.float32)        # (1,)
    A, B = _build_conv_operators(weight, H, W)

    # Explicit VMEM budget from the actual resident set (padded to the (8,128)
    # layout grid), plus headroom, capped below physical VMEM.
    blk_x = _round_up(tC, 8) * _round_up(HW, 128) * itemsize
    blk_o = _round_up(H, 8) * _round_up(W, 128) * itemsize
    a_b = KSIZE * _round_up(H, 8) * _round_up(H, 128) * 4
    b_b = KSIZE * _round_up(2 * W, 8) * _round_up(W, 128) * 4
    scr = 2 * 8 * _round_up(HW, 128) * 4 + _round_up(H, 8) * _round_up(2 * W, 128) * 4
    est = 2 * blk_x + 2 * blk_o + 2 * (a_b + b_b) + scr
    vmem_limit = int(max(16 << 20, min(vmem_cap - (8 << 20), est + (16 << 20))))

    kernel = functools.partial(_fused_kernel, C=C, tC=tC, H=H, W=W,
                               mask_tail=mask_tail)

    # TODO(synk): for N == 1 on v7x (2 TensorCores) add a second 'parallel' grid
    # axis (split H with a 3-row halo, or split C into per-core partial sums).
    # TODO(synk): for very large H*W add a spatial grid axis with a 3-row halo
    # instead of whole-image blocks.
    out = pl.pallas_call(
        kernel,
        out_shape=jax.ShapeDtypeStruct((N, H, W), x.dtype),
        grid=(N, nC),
        in_specs=[
            pl.BlockSpec((1, tC, HW), lambda n, k: (n, k, 0)),
            pl.BlockSpec(memory_space=pltpu.MemorySpace.SMEM),
            pl.BlockSpec((KSIZE, H, H), lambda n, k: (0, 0, 0)),
            pl.BlockSpec((KSIZE, 2 * W, W), lambda n, k: (0, 0, 0)),
        ],
        out_specs=pl.BlockSpec((1, H, W), lambda n, k: (n, 0, 0)),
        scratch_shapes=[
            pltpu.VMEM((1, HW), jnp.float32),            # running channel sum
            pltpu.VMEM((1, HW), jnp.float32),            # running channel max
            pltpu.VMEM((H, 2 * W), jnp.float32),         # [mean | max] planes
        ],
        compiler_params=pltpu.CompilerParams(
            dimension_semantics=("parallel", "arbitrary"),
            vmem_limit_bytes=vmem_limit,
        ),
    )(x_flat, b_flat, A, B)
    return out.reshape(N, 1, H, W)


def _reference(x, weight, bias):
    """Pure-JAX reference matching the PyTorch forward."""
    x_avg = jnp.mean(x, axis=1, keepdims=True)
    x_max = jnp.max(x, axis=1, keepdims=True)
    x2 = jnp.concatenate([x_avg, x_max], axis=1)
    xpad = jnp.pad(x2, ((0, 0), (0, 0), (PAD, PAD), (PAD, PAD)), mode="reflect")
    out = jax.lax.conv_general_dilated(
        xpad, weight, window_strides=(1, 1), padding="VALID",
        dimension_numbers=("NCHW", "OIHW", "NCHW"))
    return out + bias.reshape(1, 1, 1, 1)


if __name__ == "__main__":
    key = jax.random.PRNGKey(0)
    kx, kw, kb = jax.random.split(key, 3)

    N, C, H, W = 2, 4, 16, 16
    x = jax.random.normal(kx, (N, C, H, W), dtype=jnp.float32)

    # Deterministic Conv2d(2, 1, 7, bias=True) params (PyTorch-style uniform).
    fan_in = 2 * KSIZE * KSIZE
    bound = 1.0 / (fan_in ** 0.5)
    weight = jax.random.uniform(kw, (1, 2, KSIZE, KSIZE), jnp.float32,
                                minval=-bound, maxval=bound)
    bias = jax.random.uniform(kb, (1,), jnp.float32,
                              minval=-bound, maxval=bound)

    ref = _reference(x, weight, bias)
    out = jax.block_until_ready(spatial_attention_cga(x, weight, bias))
    assert out.shape == (N, 1, H, W)
    assert jnp.allclose(out, ref, atol=1e-4, rtol=1e-4), "mismatch vs reference"

    # Multi-step accumulator path + masked remainder block (C=20, tC=8 -> 3 steps).
    C2 = 20
    x2 = jax.random.normal(kx, (1, C2, H, W), dtype=jnp.float32)
    ref2 = _reference(x2, weight, bias)
    out2 = jax.block_until_ready(spatial_attention_cga(x2, weight, bias, tc=8))
    assert jnp.allclose(out2, ref2, atol=1e-4, rtol=1e-4), "tiled/masked-C mismatch"

    print("KERNEL_OK")
</pallas_src>

<mosaic_0001>
module attributes {stable_mosaic.version = 11 : i64} {
  func.func @_fused_kernel(%arg0: i32, %arg1: i32, %arg2: memref<1x4x256xf32, #tpu.memory_space<vmem>>, %arg3: memref<1xf32, #tpu.memory_space<smem>>, %arg4: memref<7x16x16xf32, #tpu.memory_space<vmem>>, %arg5: memref<7x32x16xf32, #tpu.memory_space<vmem>>, %arg6: memref<1x16x16xf32, #tpu.memory_space<vmem>>, %arg7: memref<1x256xf32, #tpu.memory_space<vmem>>, %arg8: memref<1x256xf32, #tpu.memory_space<vmem>>, %arg9: memref<16x32xf32, #tpu.memory_space<vmem>>) attributes {dimension_semantics = [#tpu.dimension_semantics<parallel>, #tpu.dimension_semantics<arbitrary>], iteration_bounds = array<i64: 2, 1>, scalar_prefetch = 0 : i64, scratch_operands = 3 : i64, tpu.core_type = #tpu.core_type<tc>, window_params = [{transform_indices = @transform_0, window_bounds = array<i64: 1, 4, 256>}, {transform_indices = @transform_1, window_bounds = array<i64: 1>}, {pipeline_mode = #tpu.pipeline_mode<synchronous>, transform_indices = @transform_2, window_bounds = array<i64: 7, 16, 16>}, {pipeline_mode = #tpu.pipeline_mode<synchronous>, transform_indices = @transform_3, window_bounds = array<i64: 7, 32, 16>}, {transform_indices = @transform_4, window_bounds = array<i64: 1, 16, 16>}]} {
    %c0_i32 = arith.constant 0 : i32
    %0 = arith.cmpi eq, %arg1, %c0_i32 : i32
    %1 = arith.extui %0 : i1 to i32
    %c0_i32_0 = arith.constant 0 : i32
    %2 = arith.cmpi ne, %1, %c0_i32_0 : i32
    scf.if %2 {
      %cst_14 = arith.constant 0.000000e+00 : f32
      %18 = vector.broadcast %cst_14 : f32 to vector<1x256xf32>
      %c0_15 = arith.constant 0 : index
      %c0_16 = arith.constant 0 : index
      %19 = vector.load %arg7[%c0_15, %c0_16] : memref<1x256xf32, #tpu.memory_space<vmem>>, vector<1x256xf32>
      tpu.vector_store %arg7[%c0_15, %c0_16], %18 {strides = array<i32>} : memref<1x256xf32, #tpu.memory_space<vmem>>, vector<1x256xf32>,
      %cst_17 = arith.constant 0xFF800000 : f32
      %20 = vector.broadcast %cst_17 : f32 to vector<1x256xf32>
      %c0_18 = arith.constant 0 : index
      %c0_19 = arith.constant 0 : index
      %21 = vector.load %arg8[%c0_18, %c0_19] : memref<1x256xf32, #tpu.memory_space<vmem>>, vector<1x256xf32>
      tpu.vector_store %arg8[%c0_18, %c0_19], %20 {strides = array<i32>} : memref<1x256xf32, #tpu.memory_space<vmem>>, vector<1x256xf32>,
    } else {
    }
    %c0 = arith.constant 0 : index
    %c0_1 = arith.constant 0 : index
    %c0_2 = arith.constant 0 : index
    %3 = vector.load %arg2[%c0, %c0_1, %c0_2] : memref<1x4x256xf32, #tpu.memory_space<vmem>>, vector<1x4x256xf32>
    %4 = vector.shape_cast %3 : vector<1x4x256xf32> to vector<4x256xf32>
    %c0_3 = arith.constant 0 : index
    %c0_4 = arith.constant 0 : index
    %5 = vector.load %arg7[%c0_3, %c0_4] : memref<1x256xf32, #tpu.memory_space<vmem>>, vector<1x256xf32>
    %cst = arith.constant dense<0.000000e+00> : vector<256xf32>
    %6 = vector.multi_reduction <add>, %4, %cst [0] : vector<4x256xf32> to vector<256xf32>
    %7 = vector.shape_cast %6 : vector<256xf32> to vector<1x256xf32>
    %8 = arith.addf %5, %7 : vector<1x256xf32>
    %c0_5 = arith.constant 0 : index
    %c0_6 = arith.constant 0 : index
    %9 = vector.load %arg7[%c0_5, %c0_6] : memref<1x256xf32, #tpu.memory_space<vmem>>, vector<1x256xf32>
    tpu.vector_store %arg7[%c0_5, %c0_6], %8 {strides = array<i32>} : memref<1x256xf32, #tpu.memory_space<vmem>>, vector<1x256xf32>,
    %c0_7 = arith.constant 0 : index
    %c0_8 = arith.constant 0 : index
    %10 = vector.load %arg8[%c0_7, %c0_8] : memref<1x256xf32, #tpu.memory_space<vmem>>, vector<1x256xf32>
    %cst_9 = arith.constant dense<0xFF800000> : vector<256xf32>
    %11 = vector.multi_reduction <maximumf>, %4, %cst_9 [0] : vector<4x256xf32> to vector<256xf32>
    %12 = vector.shape_cast %11 : vector<256xf32> to vector<1x256xf32>
    %13 = arith.maximumf %10, %12 : vector<1x256xf32>
    %c0_10 = arith.constant 0 : index
    %c0_11 = arith.constant 0 : index
    %14 = vector.load %arg8[%c0_10, %c0_11] : memref<1x256xf32, #tpu.memory_space<vmem>>, vector<1x256xf32>
    tpu.vector_store %arg8[%c0_10, %c0_11], %13 {strides = array<i32>} : memref<1x256xf32, #tpu.memory_space<vmem>>, vector<1x256xf32>,
    %c0_i32_12 = arith.constant 0 : i32
    %15 = arith.cmpi eq, %arg1, %c0_i32_12 : i32
    %16 = arith.extui %15 : i1 to i32
    %c0_i32_13 = arith.constant 0 : i32
    %17 = arith.cmpi ne, %16, %c0_i32_13 : i32
    scf.if %17 {
      %c0_14 = arith.constant 0 : index
      %c0_15 = arith.constant 0 : index
      %18 = vector.load %arg7[%c0_14, %c0_15] : memref<1x256xf32, #tpu.memory_space<vmem>>, vector<1x256xf32>
      %cst_16 = arith.constant 2.500000e-01 : f32
      %19 = vector.broadcast %cst_16 : f32 to vector<1x256xf32>
      %20 = arith.mulf %18, %19 : vector<1x256xf32>
      %c0_17 = arith.constant 0 : index
      %c0_18 = arith.constant 0 : index
      %21 = vector.load %arg8[%c0_17, %c0_18] : memref<1x256xf32, #tpu.memory_space<vmem>>, vector<1x256xf32>
      %22 = vector.extract_strided_slice %20 {offsets = [0, 0], sizes = [1, 16], strides = [1, 1]} : vector<1x256xf32> to vector<1x16xf32>
      %c0_19 = arith.constant 0 : index
      %c0_20 = arith.constant 0 : index
      %23 = vector.load %arg9[%c0_19, %c0_20] : memref<16x32xf32, #tpu.memory_space<vmem>>, vector<1x16xf32>
      tpu.vector_store %arg9[%c0_19, %c0_20], %22 {strides = array<i32>} : memref<16x32xf32, #tpu.memory_space<vmem>>, vector<1x16xf32>,
      %24 = vector.extract_strided_slice %21 {offsets = [0, 0], sizes = [1, 16], strides = [1, 1]} : vector<1x256xf32> to vector<1x16xf32>
      %c0_21 = arith.constant 0 : index
      %c16 = arith.constant 16 : index
      %25 = vector.load %arg9[%c0_21, %c16] : memref<16x32xf32, #tpu.memory_space<vmem>>, vector<1x16xf32>
      tpu.vector_store %arg9[%c0_21, %c16], %24 {strides = array<i32>} : memref<16x32xf32, #tpu.memory_space<vmem>>, vector<1x16xf32>,
      %26 = vector.extract_strided_slice %20 {offsets = [0, 16], sizes = [1, 16], strides = [1, 1]} : vector<1x256xf32> to vector<1x16xf32>
      %c1 = arith.constant 1 : index
      %c0_22 = arith.constant 0 : index
      %27 = vector.load %arg9[%c1, %c0_22] : memref<16x32xf32, #tpu.memory_space<vmem>>, vector<1x16xf32>
      tpu.vector_store %arg9[%c1, %c0_22], %26 {strides = array<i32>} : memref<16x32xf32, #tpu.memory_space<vmem>>, vector<1x16xf32>,
      %28 = vector.extract_strided_slice %21 {offsets = [0, 16], sizes = [1, 16], strides = [1, 1]} : vector<1x256xf32> to vector<1x16xf32>
      %c1_23 = arith.constant 1 : index
      %c16_24 = arith.constant 16 : index
      %29 = vector.load %arg9[%c1_23, %c16_24] : memref<16x32xf32, #tpu.memory_space<vmem>>, vector<1x16xf32>
      tpu.vector_store %arg9[%c1_23, %c16_24], %28 {strides = array<i32>} : memref<16x32xf32, #tpu.memory_space<vmem>>, vector<1x16xf32>,
      %30 = vector.extract_strided_slice %20 {offsets = [0, 32], sizes = [1, 16], strides = [1, 1]} : vector<1x256xf32> to vector<1x16xf32>
      %c2 = arith.constant 2 : index
      %c0_25 = arith.constant 0 : index
      %31 = vector.load %arg9[%c2, %c0_25] : memref<16x32xf32, #tpu.memory_space<vmem>>, vector<1x16xf32>
      tpu.vector_store %arg9[%c2, %c0_25], %30 {strides = array<i32>} : memref<16x32xf32, #tpu.memory_space<vmem>>, vector<1x16xf32>,
      %32 = vector.extract_strided_slice %21 {offsets = [0, 32], sizes = [1, 16], strides = [1, 1]} : vector<1x256xf32> to vector<1x16xf32>
      %c2_26 = arith.constant 2 : index
      %c16_27 = arith.constant 16 : index
      %33 = vector.load %arg9[%c2_26, %c16_27] : memref<16x32xf32, #tpu.memory_space<vmem>>, vector<1x16xf32>
      tpu.vector_store %arg9[%c2_26, %c16_27], %32 {strides = array<i32>} : memref<16x32xf32, #tpu.memory_space<vmem>>, vector<1x16xf32>,
      %34 = vector.extract_strided_slice %20 {offsets = [0, 48], sizes = [1, 16], strides = [1, 1]} : vector<1x256xf32> to vector<1x16xf32>
      %c3 = arith.constant 3 : index
      %c0_28 = arith.constant 0 : index
      %35 = vector.load %arg9[%c3, %c0_28] : memref<16x32xf32, #tpu.memory_space<vmem>>, vector<1x16xf32>
      tpu.vector_store %arg9[%c3, %c0_28], %34 {strides = array<i32>} : memref<16x32xf32, #tpu.memory_space<vmem>>, vector<1x16xf32>,
      %36 = vector.extract_strided_slice %21 {offsets = [0, 48], sizes = [1, 16], strides = [1, 1]} : vector<1x256xf32> to vector<1x16xf32>
      %c3_29 = arith.constant 3 : index
      %c16_30 = arith.constant 16 : index
      %37 = vector.load %arg9[%c3_29, %c16_30] : memref<16x32xf32, #tpu.memory_space<vmem>>, vector<1x16xf32>
      tpu.vector_store %arg9[%c3_29, %c16_30], %36 {strides = array<i32>} : memref<16x32xf32, #tpu.memory_space<vmem>>, vector<1x16xf32>,
      %38 = vector.extract_strided_slice %20 {offsets = [0, 64], sizes = [1, 16], strides = [1, 1]} : vector<1x256xf32> to vector<1x16xf32>
      %c4 = arith.constant 4 : index
      %c0_31 = arith.constant 0 : index
      %39 = vector.load %arg9[%c4, %c0_31] : memref<16x32xf32, #tpu.memory_space<vmem>>, vector<1x16xf32>
      tpu.vector_store %arg9[%c4, %c0_31], %38 {strides = array<i32>} : memref<16x32xf32, #tpu.memory_space<vmem>>, vector<1x16xf32>,
      %40 = vector.extract_strided_slice %21 {offsets = [0, 64], sizes = [1, 16], strides = [1, 1]} : vector<1x256xf32> to vector<1x16xf32>
      %c4_32 = arith.constant 4 : index
      %c16_33 = arith.constant 16 : index
      %41 = vector.load %arg9[%c4_32, %c16_33] : memref<16x32xf32, #tpu.memory_space<vmem>>, vector<1x16xf32>
      tpu.vector_store %arg9[%c4_32, %c16_33], %40 {strides = array<i32>} : memref<16x32xf32, #tpu.memory_space<vmem>>, vector<1x16xf32>,
      %42 = vector.extract_strided_slice %20 {offsets = [0, 80], sizes = [1, 16], strides = [1, 1]} : vector<1x256xf32> to vector<1x16xf32>
      %c5 = arith.constant 5 : index
      %c0_34 = arith.constant 0 : index
      %43 = vector.load %arg9[%c5, %c0_34] : memref<16x32xf32, #tpu.memory_space<vmem>>, vector<1x16xf32>
      tpu.vector_store %arg9[%c5, %c0_34], %42 {strides = array<i32>} : memref<16x32xf32, #tpu.memory_space<vmem>>, vector<1x16xf32>,
      %44 = vector.extract_strided_slice %21 {offsets = [0, 80], sizes = [1, 16], strides = [1, 1]} : vector<1x256xf32> to vector<1x16xf32>
      %c5_35 = arith.constant 5 : index
      %c16_36 = arith.constant 16 : index
      %45 = vector.load %arg9[%c5_35, %c16_36] : memref<16x32xf32, #tpu.memory_space<vmem>>, vector<1x16xf32>
      tpu.vector_store %arg9[%c5_35, %c16_36], %44 {strides = array<i32>} : memref<16x32xf32, #tpu.memory_space<vmem>>, vector<1x16xf32>,
      %46 = vector.extract_strided_slice %20 {offsets = [0, 96], sizes = [1, 16], strides = [1, 1]} : vector<1x256xf32> to vector<1x16xf32>
      %c6 = arith.constant 6 : index
      %c0_37 = arith.constant 0 : index
      %47 = vector.load %arg9[%c6, %c0_37] : memref<16x32xf32, #tpu.memory_space<vmem>>, vector<1x16xf32>
      tpu.vector_store %arg9[%c6, %c0_37], %46 {strides = array<i32>} : memref<16x32xf32, #tpu.memory_space<vmem>>, vector<1x16xf32>,
      %48 = vector.extract_strided_slice %21 {offsets = [0, 96], sizes = [1, 16], strides = [1, 1]} : vector<1x256xf32> to vector<1x16xf32>
      %c6_38 = arith.constant 6 : index
      %c16_39 = arith.constant 16 : index
      %49 = vector.load %arg9[%c6_38, %c16_39] : memref<16x32xf32, #tpu.memory_space<vmem>>, vector<1x16xf32>
      tpu.vector_store %arg9[%c6_38, %c16_39], %48 {strides = array<i32>} : memref<16x32xf32, #tpu.memory_space<vmem>>, vector<1x16xf32>,
      %50 = vector.extract_strided_slice %20 {offsets = [0, 112], sizes = [1, 16], strides = [1, 1]} : vector<1x256xf32> to vector<1x16xf32>
      %c7 = arith.constant 7 : index
      %c0_40 = arith.constant 0 : index
      %51 = vector.load %arg9[%c7, %c0_40] : memref<16x32xf32, #tpu.memory_space<vmem>>, vector<1x16xf32>
      tpu.vector_store %arg9[%c7, %c0_40], %50 {strides = array<i32>} : memref<16x32xf32, #tpu.memory_space<vmem>>, vector<1x16xf32>,
      %52 = vector.extract_strided_slice %21 {offsets = [0, 112], sizes = [1, 16], strides = [1, 1]} : vector<1x256xf32> to vector<1x16xf32>
      %c7_41 = arith.constant 7 : index
      %c16_42 = arith.constant 16 : index
      %53 = vector.load %arg9[%c7_41, %c16_42] : memref<16x32xf32, #tpu.memory_space<vmem>>, vector<1x16xf32>
      tpu.vector_store %arg9[%c7_41, %c16_42], %52 {strides = array<i32>} : memref<16x32xf32, #tpu.memory_space<vmem>>, vector<1x16xf32>,
      %54 = vector.extract_strided_slice %20 {offsets = [0, 128], sizes = [1, 16], strides = [1, 1]} : vector<1x256xf32> to vector<1x16xf32>
      %c8 = arith.constant 8 : index
      %c0_43 = arith.constant 0 : index
      %55 = vector.load %arg9[%c8, %c0_43] : memref<16x32xf32, #tpu.memory_space<vmem>>, vector<1x16xf32>
      tpu.vector_store %arg9[%c8, %c0_43], %54 {strides = array<i32>} : memref<16x32xf32, #tpu.memory_space<vmem>>, vector<1x16xf32>,
      %56 = vector.extract_strided_slice %21 {offsets = [0, 128], sizes = [1, 16], strides = [1, 1]} : vector<1x256xf32> to vector<1x16xf32>
      %c8_44 = arith.constant 8 : index
      %c16_45 = arith.constant 16 : index
      %57 = vector.load %arg9[%c8_44, %c16_45] : memref<16x32xf32, #tpu.memory_space<vmem>>, vector<1x16xf32>
      tpu.vector_store %arg9[%c8_44, %c16_45], %56 {strides = array<i32>} : memref<16x32xf32, #tpu.memory_space<vmem>>, vector<1x16xf32>,
      %58 = vector.extract_strided_slice %20 {offsets = [0, 144], sizes = [1, 16], strides = [1, 1]} : vector<1x256xf32> to vector<1x16xf32>
      %c9 = arith.constant 9 : index
      %c0_46 = arith.constant 0 : index
      %59 = vector.load %arg9[%c9, %c0_46] : memref<16x32xf32, #tpu.memory_space<vmem>>, vector<1x16xf32>
      tpu.vector_store %arg9[%c9, %c0_46], %58 {strides = array<i32>} : memref<16x32xf32, #tpu.memory_space<vmem>>, vector<1x16xf32>,
      %60 = vector.extract_strided_slice %21 {offsets = [0, 144], sizes = [1, 16], strides = [1, 1]} : vector<1x256xf32> to vector<1x16xf32>
      %c9_47 = arith.constant 9 : index
      %c16_48 = arith.constant 16 : index
      %61 = vector.load %arg9[%c9_47, %c16_48] : memref<16x32xf32, #tpu.memory_space<vmem>>, vector<1x16xf32>
      tpu.vector_store %arg9[%c9_47, %c16_48], %60 {strides = array<i32>} : memref<16x32xf32, #tpu.memory_space<vmem>>, vector<1x16xf32>,
      %62 = vector.extract_strided_slice %20 {offsets = [0, 160], sizes = [1, 16], strides = [1, 1]} : vector<1x256xf32> to vector<1x16xf32>
      %c10 = arith.constant 10 : index
      %c0_49 = arith.constant 0 : index
      %63 = vector.load %arg9[%c10, %c0_49] : memref<16x32xf32, #tpu.memory_space<vmem>>, vector<1x16xf32>
      tpu.vector_store %arg9[%c10, %c0_49], %62 {strides = array<i32>} : memref<16x32xf32, #tpu.memory_space<vmem>>, vector<1x16xf32>,
      %64 = vector.extract_strided_slice %21 {offsets = [0, 160], sizes = [1, 16], strides = [1, 1]} : vector<1x256xf32> to vector<1x16xf32>
      %c10_50 = arith.constant 10 : index
      %c16_51 = arith.constant 16 : index
      %65 = vector.load %arg9[%c10_50, %c16_51] : memref<16x32xf32, #tpu.memory_space<vmem>>, vector<1x16xf32>
      tpu.vector_store %arg9[%c10_50, %c16_51], %64 {strides = array<i32>} : memref<16x32xf32, #tpu.memory_space<vmem>>, vector<1x16xf32>,
      %66 = vector.extract_strided_slice %20 {offsets = [0, 176], sizes = [1, 16], strides = [1, 1]} : vector<1x256xf32> to vector<1x16xf32>
      %c11 = arith.constant 11 : index
      %c0_52 = arith.constant 0 : index
      %67 = vector.load %arg9[%c11, %c0_52] : memref<16x32xf32, #tpu.memory_space<vmem>>, vector<1x16xf32>
      tpu.vector_store %arg9[%c11, %c0_52], %66 {strides = array<i32>} : memref<16x32xf32, #tpu.memory_space<vmem>>, vector<1x16xf32>,
      %68 = vector.extract_strided_slice %21 {offsets = [0, 176], sizes = [1, 16], strides = [1, 1]} : vector<1x256xf32> to vector<1x16xf32>
      %c11_53 = arith.constant 11 : index
      %c16_54 = arith.constant 16 : index
      %69 = vector.load %arg9[%c11_53, %c16_54] : memref<16x32xf32, #tpu.memory_space<vmem>>, vector<1x16xf32>
      tpu.vector_store %arg9[%c11_53, %c16_54], %68 {strides = array<i32>} : memref<16x32xf32, #tpu.memory_space<vmem>>, vector<1x16xf32>,
      %70 = vector.extract_strided_slice %20 {offsets = [0, 192], sizes = [1, 16], strides = [1, 1]} : vector<1x256xf32> to vector<1x16xf32>
      %c12 = arith.constant 12 : index
      %c0_55 = arith.constant 0 : index
      %71 = vector.load %arg9[%c12, %c0_55] : memref<16x32xf32, #tpu.memory_space<vmem>>, vector<1x16xf32>
      tpu.vector_store %arg9[%c12, %c0_55], %70 {strides = array<i32>} : memref<16x32xf32, #tpu.memory_space<vmem>>, vector<1x16xf32>,
      %72 = vector.extract_strided_slice %21 {offsets = [0, 192], sizes = [1, 16], strides = [1, 1]} : vector<1x256xf32> to vector<1x16xf32>
      %c12_56 = arith.constant 12 : index
      %c16_57 = arith.constant 16 : index
      %73 = vector.load %arg9[%c12_56, %c16_57] : memref<16x32xf32, #tpu.memory_space<vmem>>, vector<1x16xf32>
      tpu.vector_store %arg9[%c12_56, %c16_57], %72 {strides = array<i32>} : memref<16x32xf32, #tpu.memory_space<vmem>>, vector<1x16xf32>,
      %74 = vector.extract_strided_slice %20 {offsets = [0, 208], sizes = [1, 16], strides = [1, 1]} : vector<1x256xf32> to vector<1x16xf32>
      %c13 = arith.constant 13 : index
      %c0_58 = arith.constant 0 : index
      %75 = vector.load %arg9[%c13, %c0_58] : memref<16x32xf32, #tpu.memory_space<vmem>>, vector<1x16xf32>
      tpu.vector_store %arg9[%c13, %c0_58], %74 {strides = array<i32>} : memref<16x32xf32, #tpu.memory_space<vmem>>, vector<1x16xf32>,
      %76 = vector.extract_strided_slice %21 {offsets = [0, 208], sizes = [1, 16], strides = [1, 1]} : vector<1x256xf32> to vector<1x16xf32>
      %c13_59 = arith.constant 13 : index
      %c16_60 = arith.constant 16 : index
      %77 = vector.load %arg9[%c13_59, %c16_60] : memref<16x32xf32, #tpu.memory_space<vmem>>, vector<1x16xf32>
      tpu.vector_store %arg9[%c13_59, %c16_60], %76 {strides = array<i32>} : memref<16x32xf32, #tpu.memory_space<vmem>>, vector<1x16xf32>,
      %78 = vector.extract_strided_slice %20 {offsets = [0, 224], sizes = [1, 16], strides = [1, 1]} : vector<1x256xf32> to vector<1x16xf32>
      %c14 = arith.constant 14 : index
      %c0_61 = arith.constant 0 : index
      %79 = vector.load %arg9[%c14, %c0_61] : memref<16x32xf32, #tpu.memory_space<vmem>>, vector<1x16xf32>
      tpu.vector_store %arg9[%c14, %c0_61], %78 {strides = array<i32>} : memref<16x32xf32, #tpu.memory_space<vmem>>, vector<1x16xf32>,
      %80 = vector.extract_strided_slice %21 {offsets = [0, 224], sizes = [1, 16], strides = [1, 1]} : vector<1x256xf32> to vector<1x16xf32>
      %c14_62 = arith.constant 14 : index
      %c16_63 = arith.constant 16 : index
      %81 = vector.load %arg9[%c14_62, %c16_63] : memref<16x32xf32, #tpu.memory_space<vmem>>, vector<1x16xf32>
      tpu.vector_store %arg9[%c14_62, %c16_63], %80 {strides = array<i32>} : memref<16x32xf32, #tpu.memory_space<vmem>>, vector<1x16xf32>,
      %82 = vector.extract_strided_slice %20 {offsets = [0, 240], sizes = [1, 16], strides = [1, 1]} : vector<1x256xf32> to vector<1x16xf32>
      %c15 = arith.constant 15 : index
      %c0_64 = arith.constant 0 : index
      %83 = vector.load %arg9[%c15, %c0_64] : memref<16x32xf32, #tpu.memory_space<vmem>>, vector<1x16xf32>
      tpu.vector_store %arg9[%c15, %c0_64], %82 {strides = array<i32>} : memref<16x32xf32, #tpu.memory_space<vmem>>, vector<1x16xf32>,
      %84 = vector.extract_strided_slice %21 {offsets = [0, 240], sizes = [1, 16], strides = [1, 1]} : vector<1x256xf32> to vector<1x16xf32>
      %c15_65 = arith.constant 15 : index
      %c16_66 = arith.constant 16 : index
      %85 = vector.load %arg9[%c15_65, %c16_66] : memref<16x32xf32, #tpu.memory_space<vmem>>, vector<1x16xf32>
      tpu.vector_store %arg9[%c15_65, %c16_66], %84 {strides = array<i32>} : memref<16x32xf32, #tpu.memory_space<vmem>>, vector<1x16xf32>,
      %c0_67 = arith.constant 0 : index
      %c0_68 = arith.constant 0 : index
      %86 = vector.load %arg9[%c0_67, %c0_68] : memref<16x32xf32, #tpu.memory_space<vmem>>, vector<16x32xf32>
      %c0_69 = arith.constant 0 : index
      %87 = memref.load %arg3[%c0_69] : memref<1xf32, #tpu.memory_space<smem>>
      %88 = vector.broadcast %87 : f32 to vector<16x16xf32>
      %c0_70 = arith.constant 0 : index
      %c0_71 = arith.constant 0 : index
      %c0_72 = arith.constant 0 : index
      %89 = vector.load %arg5[%c0_70, %c0_71, %c0_72] : memref<7x32x16xf32, #tpu.memory_space<vmem>>, vector<1x32x16xf32>
      %90 = vector.shape_cast %89 : vector<1x32x16xf32> to vector<32x16xf32>
      %cst_73 = arith.constant dense<0.000000e+00> : vector<16x16xf32>
      %91 = tpu.matmul %86, %90, %cst_73 {dimension_numbers = #tpu.dot_dimension_numbers<[1], [0], [0], [1], [0, 0, 1, 1], [], []>, precision = #tpu.contract_precision<fp32>} : vector<16x32xf32>, vector<32x16xf32>, vector<16x16xf32> -> vector<16x16xf32>
      %c0_74 = arith.constant 0 : index
      %c0_75 = arith.constant 0 : index
      %c0_76 = arith.constant 0 : index
      %92 = vector.load %arg4[%c0_74, %c0_75, %c0_76] : memref<7x16x16xf32, #tpu.memory_space<vmem>>, vector<1x16x16xf32>
      %93 = vector.shape_cast %92 : vector<1x16x16xf32> to vector<16x16xf32>
      %cst_77 = arith.constant dense<0.000000e+00> : vector<16x16xf32>
      %94 = tpu.matmul %93, %91, %cst_77 {dimension_numbers = #tpu.dot_dimension_numbers<[1], [0], [0], [1], [0, 0, 1, 1], [], []>, precision = #tpu.contract_precision<fp32>} : vector<16x16xf32>, vector<16x16xf32>, vector<16x16xf32> -> vector<16x16xf32>
      %95 = arith.addf %88, %94 : vector<16x16xf32>
      %c1_78 = arith.constant 1 : index
      %c0_79 = arith.constant 0 : index
      %c0_80 = arith.constant 0 : index
      %96 = vector.load %arg5[%c1_78, %c0_79, %c0_80] : memref<7x32x16xf32, #tpu.memory_space<vmem>>, vector<1x32x16xf32>
      %97 = vector.shape_cast %96 : vector<1x32x16xf32> to vector<32x16xf32>
      %cst_81 = arith.constant dense<0.000000e+00> : vector<16x16xf32>
      %98 = tpu.matmul %86, %97, %cst_81 {dimension_numbers = #tpu.dot_dimension_numbers<[1], [0], [0], [1], [0, 0, 1, 1], [], []>, precision = #tpu.contract_precision<fp32>} : vector<16x32xf32>, vector<32x16xf32>, vector<16x16xf32> -> vector<16x16xf32>
      %c1_82 = arith.constant 1 : index
      %c0_83 = arith.constant 0 : index
      %c0_84 = arith.constant 0 : index
      %99 = vector.load %arg4[%c1_82, %c0_83, %c0_84] : memref<7x16x16xf32, #tpu.memory_space<vmem>>, vector<1x16x16xf32>
      %100 = vector.shape_cast %99 : vector<1x16x16xf32> to vector<16x16xf32>
      %cst_85 = arith.constant dense<0.000000e+00> : vector<16x16xf32>
      %101 = tpu.matmul %100, %98, %cst_85 {dimension_numbers = #tpu.dot_dimension_numbers<[1], [0], [0], [1], [0, 0, 1, 1], [], []>, precision = #tpu.contract_precision<fp32>} : vector<16x16xf32>, vector<16x16xf32>, vector<16x16xf32> -> vector<16x16xf32>
      %102 = arith.addf %95, %101 : vector<16x16xf32>
      %c2_86 = arith.constant 2 : index
      %c0_87 = arith.constant 0 : index
      %c0_88 = arith.constant 0 : index
      %103 = vector.load %arg5[%c2_86, %c0_87, %c0_88] : memref<7x32x16xf32, #tpu.memory_space<vmem>>, vector<1x32x16xf32>
      %104 = vector.shape_cast %103 : vector<1x32x16xf32> to vector<32x16xf32>
      %cst_89 = arith.constant dense<0.000000e+00> : vector<16x16xf32>
      %105 = tpu.matmul %86, %104, %cst_89 {dimension_numbers = #tpu.dot_dimension_numbers<[1], [0], [0], [1], [0, 0, 1, 1], [], []>, precision = #tpu.contract_precision<fp32>} : vector<16x32xf32>, vector<32x16xf32>, vector<16x16xf32> -> vector<16x16xf32>
      %c2_90 = arith.constant 2 : index
      %c0_91 = arith.constant 0 : index
      %c0_92 = arith.constant 0 : index
      %106 = vector.load %arg4[%c2_90, %c0_91, %c0_92] : memref<7x16x16xf32, #tpu.memory_space<vmem>>, vector<1x16x16xf32>
      %107 = vector.shape_cast %106 : vector<1x16x16xf32> to vector<16x16xf32>
      %cst_93 = arith.constant dense<0.000000e+00> : vector<16x16xf32>
      %108 = tpu.matmul %107, %105, %cst_93 {dimension_numbers = #tpu.dot_dimension_numbers<[1], [0], [0], [1], [0, 0, 1, 1], [], []>, precision = #tpu.contract_precision<fp32>} : vector<16x16xf32>, vector<16x16xf32>, vector<16x16xf32> -> vector<16x16xf32>
      %109 = arith.addf %102, %108 : vector<16x16xf32>
      %c3_94 = arith.constant 3 : index
      %c0_95 = arith.constant 0 : index
      %c0_96 = arith.constant 0 : index
      %110 = vector.load %arg5[%c3_94, %c0_95, %c0_96] : memref<7x32x16xf32, #tpu.memory_space<vmem>>, vector<1x32x16xf32>
      %111 = vector.shape_cast %110 : vector<1x32x16xf32> to vector<32x16xf32>
      %cst_97 = arith.constant dense<0.000000e+00> : vector<16x16xf32>
      %112 = tpu.matmul %86, %111, %cst_97 {dimension_numbers = #tpu.dot_dimension_numbers<[1], [0], [0], [1], [0, 0, 1, 1], [], []>, precision = #tpu.contract_precision<fp32>} : vector<16x32xf32>, vector<32x16xf32>, vector<16x16xf32> -> vector<16x16xf32>
      %c3_98 = arith.constant 3 : index
      %c0_99 = arith.constant 0 : index
      %c0_100 = arith.constant 0 : index
      %113 = vector.load %arg4[%c3_98, %c0_99, %c0_100] : memref<7x16x16xf32, #tpu.memory_space<vmem>>, vector<1x16x16xf32>
      %114 = vector.shape_cast %113 : vector<1x16x16xf32> to vector<16x16xf32>
      %cst_101 = arith.constant dense<0.000000e+00> : vector<16x16xf32>
      %115 = tpu.matmul %114, %112, %cst_101 {dimension_numbers = #tpu.dot_dimension_numbers<[1], [0], [0], [1], [0, 0, 1, 1], [], []>, precision = #tpu.contract_precision<fp32>} : vector<16x16xf32>, vector<16x16xf32>, vector<16x16xf32> -> vector<16x16xf32>
      %116 = arith.addf %109, %115 : vector<16x16xf32>
      %c4_102 = arith.constant 4 : index
      %c0_103 = arith.constant 0 : index
      %c0_104 = arith.constant 0 : index
      %117 = vector.load %arg5[%c4_102, %c0_103, %c0_104] : memref<7x32x16xf32, #tpu.memory_space<vmem>>, vector<1x32x16xf32>
      %118 = vector.shape_cast %117 : vector<1x32x16xf32> to vector<32x16xf32>
      %cst_105 = arith.constant dense<0.000000e+00> : vector<16x16xf32>
      %119 = tpu.matmul %86, %118, %cst_105 {dimension_numbers = #tpu.dot_dimension_numbers<[1], [0], [0], [1], [0, 0, 1, 1], [], []>, precision = #tpu.contract_precision<fp32>} : vector<16x32xf32>, vector<32x16xf32>, vector<16x16xf32> -> vector<16x16xf32>
      %c4_106 = arith.constant 4 : index
      %c0_107 = arith.constant 0 : index
      %c0_108 = arith.constant 0 : index
      %120 = vector.load %arg4[%c4_106, %c0_107, %c0_108] : memref<7x16x16xf32, #tpu.memory_space<vmem>>, vector<1x16x16xf32>
      %121 = vector.shape_cast %120 : vector<1x16x16xf32> to vector<16x16xf32>
      %cst_109 = arith.constant dense<0.000000e+00> : vector<16x16xf32>
      %122 = tpu.matmul %121, %119, %cst_109 {dimension_numbers = #tpu.dot_dimension_numbers<[1], [0], [0], [1], [0, 0, 1, 1], [], []>, precision = #tpu.contract_precision<fp32>} : vector<16x16xf32>, vector<16x16xf32>, vector<16x16xf32> -> vector<16x16xf32>
      %123 = arith.addf %116, %122 : vector<16x16xf32>
      %c5_110 = arith.constant 5 : index
      %c0_111 = arith.constant 0 : index
      %c0_112 = arith.constant 0 : index
      %124 = vector.load %arg5[%c5_110, %c0_111, %c0_112] : memref<7x32x16xf32, #tpu.memory_space<vmem>>, vector<1x32x16xf32>
      %125 = vector.shape_cast %124 : vector<1x32x16xf32> to vector<32x16xf32>
      %cst_113 = arith.constant dense<0.000000e+00> : vector<16x16xf32>
      %126 = tpu.matmul %86, %125, %cst_113 {dimension_numbers = #tpu.dot_dimension_numbers<[1], [0], [0], [1], [0, 0, 1, 1], [], []>, precision = #tpu.contract_precision<fp32>} : vector<16x32xf32>, vector<32x16xf32>, vector<16x16xf32> -> vector<16x16xf32>
      %c5_114 = arith.constant 5 : index
      %c0_115 = arith.constant 0 : index
      %c0_116 = arith.constant 0 : index
      %127 = vector.load %arg4[%c5_114, %c0_115, %c0_116] : memref<7x16x16xf32, #tpu.memory_space<vmem>>, vector<1x16x16xf32>
      %128 = vector.shape_cast %127 : vector<1x16x16xf32> to vector<16x16xf32>
      %cst_117 = arith.constant dense<0.000000e+00> : vector<16x16xf32>
      %129 = tpu.matmul %128, %126, %cst_117 {dimension_numbers = #tpu.dot_dimension_numbers<[1], [0], [0], [1], [0, 0, 1, 1], [], []>, precision = #tpu.contract_precision<fp32>} : vector<16x16xf32>, vector<16x16xf32>, vector<16x16xf32> -> vector<16x16xf32>
      %130 = arith.addf %123, %129 : vector<16x16xf32>
      %c6_118 = arith.constant 6 : index
      %c0_119 = arith.constant 0 : index
      %c0_120 = arith.constant 0 : index
      %131 = vector.load %arg5[%c6_118, %c0_119, %c0_120] : memref<7x32x16xf32, #tpu.memory_space<vmem>>, vector<1x32x16xf32>
      %132 = vector.shape_cast %131 : vector<1x32x16xf32> to vector<32x16xf32>
      %cst_121 = arith.constant dense<0.000000e+00> : vector<16x16xf32>
      %133 = tpu.matmul %86, %132, %cst_121 {dimension_numbers = #tpu.dot_dimension_numbers<[1], [0], [0], [1], [0, 0, 1, 1], [], []>, precision = #tpu.contract_precision<fp32>} : vector<16x32xf32>, vector<32x16xf32>, vector<16x16xf32> -> vector<16x16xf32>
      %c6_122 = arith.constant 6 : index
      %c0_123 = arith.constant 0 : index
      %c0_124 = arith.constant 0 : index
      %134 = vector.load %arg4[%c6_122, %c0_123, %c0_124] : memref<7x16x16xf32, #tpu.memory_space<vmem>>, vector<1x16x16xf32>
      %135 = vector.shape_cast %134 : vector<1x16x16xf32> to vector<16x16xf32>
      %cst_125 = arith.constant dense<0.000000e+00> : vector<16x16xf32>
      %136 = tpu.matmul %135, %133, %cst_125 {dimension_numbers = #tpu.dot_dimension_numbers<[1], [0], [0], [1], [0, 0, 1, 1], [], []>, precision = #tpu.contract_precision<fp32>} : vector<16x16xf32>, vector<16x16xf32>, vector<16x16xf32> -> vector<16x16xf32>
      %137 = arith.addf %130, %136 : vector<16x16xf32>
      %c0_126 = arith.constant 0 : index
      %c0_127 = arith.constant 0 : index
      %c0_128 = arith.constant 0 : index
      %138 = vector.load %arg6[%c0_126, %c0_127, %c0_128] : memref<1x16x16xf32, #tpu.memory_space<vmem>>, vector<1x16x16xf32>
      %139 = vector.shape_cast %138 : vector<1x16x16xf32> to vector<16x16xf32>
      %140 = vector.shape_cast %137 : vector<16x16xf32> to vector<1x16x16xf32>
      tpu.vector_store %arg6[%c0_126, %c0_127, %c0_128], %140 {strides = array<i32>} : memref<1x16x16xf32, #tpu.memory_space<vmem>>, vector<1x16x16xf32>,
    } else {
    }
    return
  }
  func.func @transform_0(%arg0: i32, %arg1: i32) -> (i32, i32, i32) {
    %c0_i32 = arith.constant 0 : i32
    %c0_i32_0 = arith.constant 0 : i32
    return %arg0, %arg1, %c0_i32 : i32, i32, i32
  }
  func.func @transform_1(%arg0: i32, %arg1: i32) -> i32 {
    %c0_i32 = arith.constant 0 : i32
    %c0_i32_0 = arith.constant 0 : i32
    return %c0_i32 : i32
  }
  func.func @transform_2(%arg0: i32, %arg1: i32) -> (i32, i32, i32) {
    %c0_i32 = arith.constant 0 : i32
    %c0_i32_0 = arith.constant 0 : i32
    %c0_i32_1 = arith.constant 0 : i32
    %c0_i32_2 = arith.constant 0 : i32
    return %c0_i32, %c0_i32_0, %c0_i32_1 : i32, i32, i32
  }
  func.func @transform_3(%arg0: i32, %arg1: i32) -> (i32, i32, i32) {
    %c0_i32 = arith.constant 0 : i32
    %c0_i32_0 = arith.constant 0 : i32
    %c0_i32_1 = arith.constant 0 : i32
    %c0_i32_2 = arith.constant 0 : i32
    return %c0_i32, %c0_i32_0, %c0_i32_1 : i32, i32, i32
  }
  func.func @transform_4(%arg0: i32, %arg1: i32) -> (i32, i32, i32) {
    %c0_i32 = arith.constant 0 : i32
    %c0_i32_0 = arith.constant 0 : i32
    %c0_i32_1 = arith.constant 0 : i32
    return %arg0, %c0_i32, %c0_i32_0 : i32, i32, i32
  }
}

</mosaic_0001>

<bundles_post_ra>
// kernel: tpu_custom_call.1
= control target key start
LH: loop header
LB: loop body
LE: loop exit
PB: predicated region body
PF: predicated region fallthrough
CT: control target
= control target key end

     0   :  { %s10816_s0 = inlined_call_operand.vmem [shape: f32[2,4,256], index: 0, kind: input, shape index: {}]   ;;  %s10817_s1 = inlined_call_operand.<no memory space> [shape: f32[1], index: 1, kind: input, shape index: {}]   ;;  %s10818_s2 = inlined_call_operand.vmem [shape: f32[7,16,16], index: 2, kind: input, shape index: {}]   ;;  %s10819_s3 = inlined_call_operand.vmem [shape: f32[7,32,16], index: 3, kind: input, shape index: {}]   ;;  %s10820_s4 = inlined_call_operand.hbm [shape: f32[2,16,16], index: 4, kind: output, shape index: {}]  }
   0x1   :  { %9 = sst [smem:[#allocation5]] %s10817_s1 }
   0x2   :  { %10 = vsyncpa [#allocation7], 0 }
   0x3   :  { %12 = vsyncpa [#allocation7 + $0x1], 0  ;;  %s9957_s17 = smov 0   ;;  %s9959_s18 = smov 0  }
   0x4   :  { %s9961_s19 = smov 0   ;;  %s9963_s20 = smov 0  }
   0x5   :  { %s9965_s21 = smov 0   ;;  %s9967_s22 = smov 0  }
   0x6 LB: > { %s7883_s1 = sadd.s32 4294967295, %s9914_s22   ;;  %s7884_s23 = sadd.s32 4294967294, %s9914_s22   ;;  %s9914_s22 = sphi %s9967_s22, %s18_s22   ;;  %s9910_s21 = sphi %s9965_s21, %s10829_s21   ;;  %s9906_s20 = sphi %s9963_s20, %s10828_s20   ;;  %s9902_s19 = sphi %s9961_s19, %s10827_s19   ;;  %s9898_s18 = sphi %s9959_s18, %s10826_s18   ;;  %s9894_s17 = sphi %s9957_s17, %s10825_s17  }
   0x7   : > { %s30_s24 = sadd.s32 1, %s9910_s21  ;;  %s128_s25 = sadd.s32 1, %s9902_s19 }
   0x8   : > { %p32_p0 = scmp.ge.s32.totalorder %s30_s24, 2  ;;  %p138_p1 = scmp.ne.s32.totalorder %s9902_s19, %s9898_s18 }
   0x9   : > { %p139_p2 = scmp.eq.s32.totalorder %s7883_s1, 1  ;;  %p144_p3 = scmp.ne.s32.totalorder %s9898_s18, %s9894_s17 }
   0xa   : > { %s10831_s24 = smov (%p32_p0, %s30_s24), 0  ;;  %p145_p5 = scmp.eq.s32.totalorder %s7884_s23, 1 }
   0xb   : > { %p9997_p4 = por %p139_p2, %p138_p1  ;;  %s125_s27 = ssub.s32 %s9910_s21, %s10831_s24 }
   0xc   : > { %p7887_p6 = scmp.ge.s32.totalorder %s9914_s22, 1  ;;  %p126_p7 = scmp.eq.s32.totalorder %s125_s27, 0 }
   0xd   : > { %p10004_p8 = por %p145_p5, %p144_p3  ;;  %p184_p9 = scmp.lt.s32.totalorder %s9914_s22, 3 }
   0xe   : > { %s10010_s29 = scalar_select %p126_p7, %s9902_s19, %s128_s25  }
   0xf   : > { %p185_p10 = pnand %p7887_p6, %p184_p9 }
  0x10   : > { %p214_p11 = scmp.lt.s32.totalorder (!%p185_p10), %s9906_s20, 1  ;;  %v227_v0 = vlaneseq (!%p185_p10)  ;;  %v9916_v2 = vmov (!%p185_p10), 0.0   ;;  %v9917_v3 = vmov (!%p185_p10), -inf   ;;  %vm238_vm1 = vcmask (!%p185_p10), 1043456   ;;  %s9919_s9 = smov (!%p185_p10), 112   ;;  %v460_v58 = vld [vmem:[%s10819_s3] sm:$0xff] (!%p185_p10) }
  0x11   : > { %188 = sbr.rel (%p185_p10) target bundleno = 1583 (0x62f), region = 36  ;;  %v9918_v16 = vmov (!%p185_p10), 1966171168   ;;  %vm318_vm2 = vcmask (!%p185_p10), 122880   ;;  %s9920_s10 = smov (!%p185_p10), 16   ;;  %v461_v59 = vld [vmem:[%s10819_s3 + $0x8] sm:$0xff] (!%p185_p10) }
  0x12   : > { %vm10014_vm0 = vcmp.lt.s32.totalorder (!%p185_p10), %v227_v0, 256  ;;  %v257_v17 = vunpack.c.l.s4 (!%p185_p10), %v9918_v16  ;;  %v260_v27 = vshrl.u32 (!%p185_p10), %v227_v0, 7  ;;  %s9921_s11 = smov (!%p185_p10), 80   ;;  %s9922_s12 = smov (!%p185_p10), 96   ;;  %v472_v60 = vand.u32 (!%p185_p10), 4294901760, %v460_v58  ;;  %v462_v1 = vld [vmem:[%s10819_s3 + $0x10] sm:$0xff] (!%p185_p10) }
  0x13   : > { %231 = vst.msk [vmem:[#allocation2] sm:$0x3] (!%p185_p10), %vm10014_vm0, %v9916_v2  ;;  %232 = vst.msk [vmem:[#allocation3] sm:$0x3] (!%p185_p10), %vm10014_vm0, %v9917_v3  ;;  %s9923_s13 = smov (!%p185_p10), 48   ;;  %s9924_s14 = smov (!%p185_p10), 64  }
  0x14   : > { %v258_v26 = vunpack.c.0.s8 (!%p185_p10), %v257_v17  ;;  %v323_v49 = vsub.s32 (!%p185_p10), 0, %v260_v27  ;;  %v390_v53 = vsub.s32 (!%p185_p10), 1, %v260_v27  ;;  %s9925_s15 = smov (!%p185_p10), 32   ;;  %v475_v61 = vand.u32 (!%p185_p10), 4294901760, %v461_v59  ;;  %v463_v2 = vld [vmem:[%s10819_s3 + $0x18] sm:$0xff] (!%p185_p10)  ;;  %s211_s16 = sand.u32 (!%p185_p10), 1, %s9898_s18  }
  0x15   : > { %v562_v63 = vsub.f32 (!%p185_p10), %v460_v58, %v472_v60  ;;  %v478_v3 = vand.u32 (!%p185_p10), 4294901760, %v462_v1  ;;  %vm328_vm3 = vcmask (!%p185_p10), 254080   ;;  %vm464_vm4 = vcmask (!%p185_p10), 261120   ;;  %s7888_s1 = sshll.u32 (!%p185_p10), %s211_s16, 4  ;;  %s7933_s27 = sshll.u32 (!%p185_p10), %s9906_s20, 8 }
  0x16   : > { %v261_v36 = vsub.s32 (!%p185_p10), %v258_v26, %v260_v27  ;;  %v10066_v62 = vpack.c.bf16 (!%p185_p10), %v475_v61, %v472_v60  ;;  %v569_v0 = vsub.f32 (!%p185_p10), %v461_v59, %v475_v61  ;;  %vm1001_vm5 = vcmask (!%p185_p10), 130048   ;;  %s213_s23 = scalar_lea.vmem (!%p185_p10), [#allocation6], %s7888_s1  ;;  %s10766_s6 = scalar_lea.hbm (!%p185_p10), %s10820_s4, %s7933_s27 }
  0x17   : > { %s7804_s25 = sshll.u32 (!%p185_p10), %s213_s23, 4  ;;  %s10761_s25 = int_to_ptr.vmem [resolvable:$true] %s7804_s25 }
  0x18   : > { %s215_s30 = scalar_select %p214_p11, %s9906_s20, 1  ;;  %9111 = vmatprep.subr.bf16.mxu0 %v10066_v62 }
  0x19   : > { %9113 = vmatpush3.bf16.msra.mxu0 %v10066_v62  ;;  %s10770_s20 = scalar_lea.sflag [#allocation7], %s211_s16  ;;  %s9836_s7 = scalar_lea.vmem %s10761_s25, 256 }
  0x1a   : > { %s7932_s5 = sshll.u32 %s215_s30, 3  ;;  %v234_v43 = vld [vmem:[#allocation2] sm:$0x3]  ;;  %v277_v44 = vld [vmem:[#allocation3] sm:$0x3]  ;;  %p9837_p12 = scmp.ne.s32.totalorder %s10761_s25, %s9836_s7 }
  0x1b   : > { %s222_s8 = scalar_lea.vmem %s10816_s0, %s7932_s5 }
  0x1c   : > { %v233_v4 = vld [vmem:[%s222_s8] sm:$0xff]  ;;  %p9838_p13 = pnand %p9837_p12, %p9997_p4  ;;  %s9926_s8 = smov [#allocation6]  }
  0x1d   : > { %v236_v5 = vcombine.high %v233_v4, %v233_v4  ;;  %v239_v6 = vsel %vm238_vm1, %v233_v4, 0.0  ;;  %v278_v7 = vsel %vm238_vm1, %v233_v4, -inf  ;;  %v481_v4 = vand.u32 4294901760, %v463_v2 }
  0x1e   : > { %v240_v8 = vrot.slane %v239_v6, 4  ;;  %v279_v9 = vrot.slane %v278_v7, 4  ;;  %p9839_p0 = pneg %p9838_p13 }
  0x1f   : > { %v285_v10 = vsel %vm238_vm1, %v236_v5, -inf  ;;  %v246_v11 = vsel %vm238_vm1, %v236_v5, 0.0  ;;  %v563_v5 = vand.u32 4294901760, %v562_v63 }
  0x20   : > { %v241_v12 = vadd.f32 %v240_v8, %v239_v6  ;;  %v280_v13 = vmax.f32 %v278_v7, %v279_v9  ;;  %v286_v14 = vrot.slane %v285_v10, 4  ;;  %v247_v15 = vrot.slane %v246_v11, 4 }
  0x21   : > { %v570_v6 = vand.u32 4294901760, %v569_v0  ;;  %v10080_v7 = vpack.c.bf16 %v481_v4, %v478_v3  ;;  %v564_v8 = vsub.f32 %v562_v63, %v563_v5 }
  0x22   : > { %v242_v18 = vrot.slane %v241_v12, 2  ;;  %v281_v19 = vrot.slane %v280_v13, 2  ;;  %v287_v20 = vmax.f32 %v285_v10, %v286_v14  ;;  %v248_v21 = vadd.f32 %v247_v15, %v246_v11 }
  0x23   : > { %v571_v9 = vsub.f32 %v569_v0, %v570_v6  ;;  %v576_v10 = vsub.f32 %v462_v1, %v478_v3  ;;  %v583_v11 = vsub.f32 %v463_v2, %v481_v4  ;;  %9115 = vmatprep.subr.bf16.mxu0 %v10080_v7 }
  0x24   : > { %v243_v22 = vadd.f32 %v242_v18, %v241_v12  ;;  %v282_v23 = vmax.f32 %v280_v13, %v281_v19  ;;  %v288_v24 = vrot.slane %v287_v20, 2  ;;  %v249_v25 = vrot.slane %v248_v21, 2  ;;  %9117 = vmatpush3.bf16.msra.mxu0 %v10080_v7 }
  0x25   : > { %v565_v12 = vand.u32 4294901760, %v564_v8  ;;  %v572_v13 = vand.u32 4294901760, %v571_v9  ;;  %v577_v14 = vand.u32 4294901760, %v576_v10  ;;  %v584_v15 = vand.u32 4294901760, %v583_v11 }
  0x26   : > { %v244_v28 = vrot.slane %v243_v22, 1  ;;  %v283_v29 = vrot.slane %v282_v23, 1  ;;  %v289_v30 = vmax.f32 %v287_v20, %v288_v24  ;;  %v250_v31 = vadd.f32 %v249_v25, %v248_v21 }
  0x27   : > { %v10084_v16 = vpack.c.bf16 %v572_v13, %v565_v12  ;;  %v578_v17 = vsub.f32 %v576_v10, %v577_v14  ;;  %v585_v18 = vsub.f32 %v583_v11, %v584_v15  ;;  %v10093_v24 = vpack.c.bf16 %v570_v6, %v563_v5  ;;  %v999_v5 = vld [vmem:[%s10818_s2] sm:$0xff] }
  0x28   : > { %v245_v32 = vadd.f32 %v244_v28, %v243_v22  ;;  %v284_v33 = vmax.f32 %v282_v23, %v283_v29  ;;  %v290_v34 = vrot.slane %v289_v30, 1  ;;  %v251_v35 = vrot.slane %v250_v31, 1 }
  0x29   : > { %9119 = vmatprep.subr.bf16.mxu0 %v10084_v16  ;;  %v579_v19 = vand.u32 4294901760, %v578_v17  ;;  %v586_v20 = vand.u32 4294901760, %v585_v18  ;;  %v10089_v22 = vpack.c.bf16 %v569_v0, %v562_v63  ;;  %v10091_v23 = vpack.c.bf16 %v583_v11, %v576_v10  ;;  %v1000_v11 = vld [vmem:[%s10818_s2 + $0x8] sm:$0xff]  ;;  %v7897_v17 = vld [vmem:[%s10819_s3 + $0x40] sm:$0xff] }
  0x2a   : > { %v291_v37 = vmax.f32 %v289_v30, %v290_v34  ;;  %v252_v38 = vadd.f32 %v251_v35, %v250_v31  ;;  %v10095_v25 = vpack.c.bf16 %v584_v15, %v577_v14  ;;  %v1003_v6 = vsel %vm1001_vm5, %v999_v5, 0  ;;  %v10212_v15 = vld [vmem:[%s10819_s3 + $0x20] sm:$0xff]  ;;  %v7898_v18 = vld [vmem:[%s10819_s3 + $0x48] sm:$0xff] }
  0x2b   : > { %v10087_v21 = vpack.c.bf16 %v586_v20, %v579_v19  ;;  %v10190_v8 = vand.u32 4294901760, %v1003_v6  ;;  %v1006_v12 = vsel %vm1001_vm5, %v1000_v11, 0  ;;  %v1518_v20 = vand.u32 4294901760, %v10212_v15 }
  0x2c   : > { %v294_v39 = vcombine.low %v284_v33, %v291_v37  ;;  %v255_v40 = vcombine.low %v245_v32, %v252_v38  ;;  %v10204_v13 = vand.u32 4294901760, %v1006_v12 }
  0x2d   : > { %v10193_v9 = vsub.f32 %v1003_v6, %v10190_v8  ;;  %8431 = vmatprep.mubr.f32.mxu1 %v10190_v8 }
  0x2e   : > { %v301_v41 = vrot.slane %v294_v39, %v261_v36  ;;  %v262_v42 = vrot.slane %v255_v40, %v261_v36  ;;  %v10207_v14 = vsub.f32 %v1006_v12, %v10204_v13 }
  0x30   : > { %v308_v45 = vrot.slane %v301_v41, %v261_v36  ;;  %v269_v46 = vrot.slane %v262_v42, %v261_v36  ;;  %v1087_v19 = vand.u32 4294901760, %v10207_v14 }
  0x32   : > { %v310_v47 = vmax.f32 %v277_v44, %v308_v45  ;;  %v271_v48 = vadd.f32 %v269_v46, %v234_v43 }
  0x34   : > { %311 = vst.msk [vmem:[#allocation3] sm:$0x3] %vm10014_vm0, %v310_v47  ;;  %276 = vst.msk [vmem:[#allocation2] sm:$0x3] %vm10014_vm0, %v271_v48 }
  0x3b   : > { %v10029_v50 = vld [vmem:[#allocation3] sm:$0x3]  ;;  %v315_v51 = vld [vmem:[#allocation2] sm:$0x3] }
  0x3c   : > { %v324_v52 = vrot.slane %v10029_v50, %v323_v49  ;;  %v316_v54 = vmul.f32 0.25, %v315_v51  ;;  %v10039_v57 = vrot.slane %v10029_v50, %v390_v53 }
  0x3e   : > { %344 = vrot.lane.b32.xlu0 %v324_v52, %s9919_s9  ;;  %325 = vrot.lane.b32.xlu1 %v324_v52, %s9920_s10  ;;  %v391_v55 = vrot.slane %v316_v54, %v390_v53  ;;  %319 = vst.msk [vmem:[#allocation4] sm:$0x1] %vm318_vm2, %v316_v54  ;;  %v334_v56 = vrot.slane %v316_v54, %v323_v49 }
  0x40   : > { %393 = vst.msk [vmem:[#allocation4 + $0x8] sm:$0x1] %vm318_vm2, %v391_v55 }
  0x42   : > { %360 = vrot.lane.b32.xlu0 %v324_v52, %s9921_s11  ;;  %352 = vrot.lane.b32.xlu1 %v324_v52, %s9922_s12 }
  0x46   : > { %376 = vrot.lane.b32.xlu0 %v324_v52, %s9923_s13  ;;  %368 = vrot.lane.b32.xlu1 %v324_v52, %s9924_s14 }
  0x4a   : > { %384 = vrot.lane.b32.xlu1 %v324_v52, %s9925_s15  ;;  %335 = vrot.lane.b32.xlu0 %v334_v56, %s9919_s9 }
  0x4e   : > { %398 = vrot.lane.b32.xlu1 %v10039_v57, %s9920_s10  ;;  %340 = vrot.lane.b32.xlu0 %v334_v56, %s9922_s12 }
  0x52   : > { %348 = vrot.lane.b32.xlu1 %v334_v56, %s9921_s11  ;;  %364 = vrot.lane.b32.xlu0 %v334_v56, %s9923_s13 }
  0x56   : > { %356 = vrot.lane.b32.xlu1 %v334_v56, %s9924_s14  ;;  %380 = vrot.lane.b32.xlu0 %v334_v56, %s9920_s10 }
  0x5a   : > { %372 = vrot.lane.b32.xlu1 %v334_v56, %s9925_s15  ;;  %402 = vrot.lane.b32.xlu0 %v391_v55, %s9919_s9 }
  0x5e   : > { %408 = vrot.lane.b32.xlu1 %v391_v55, %s9922_s12  ;;  %416 = vrot.lane.b32.xlu0 %v391_v55, %s9921_s11 }
  0x62   : > { %424 = vrot.lane.b32.xlu1 %v391_v55, %s9924_s14  ;;  %432 = vrot.lane.b32.xlu0 %v391_v55, %s9923_s13 }
  0x66   : > { %440 = vrot.lane.b32.xlu1 %v391_v55, %s9925_s15  ;;  %448 = vrot.lane.b32.xlu0 %v391_v55, %s9920_s10 }
  0x6a   : > { %420 = vrot.lane.b32.xlu1 %v10039_v57, %s9922_s12  ;;  %412 = vrot.lane.b32.xlu0 %v10039_v57, %s9919_s9  ;;  %s9840_s9 = sshll.u32 %s9926_s8, 4  ;;  %s9841_s9 = int_to_ptr.vmem [resolvable:$false] %s9840_s9 }
  0x6b   : > { %s9842_s10 = scalar_lea.vmem %s9841_s9, 512  ;;  %p9843_p1 = scmp.lt.s32.totalorder %s10761_s25, %s9841_s9 }
  0x6c   : > { %p9844_p2 = scmp.lt.s32.totalorder %s9842_s10, %s9836_s7 }
  0x6e   : > { %436 = vrot.lane.b32.xlu1 %v10039_v57, %s9924_s14  ;;  %428 = vrot.lane.b32.xlu0 %v10039_v57, %s9921_s11  ;;  %p9845_p3 = por %p9844_p2, %p9843_p1 }
  0x70   : > { %p9846_p5 = pnand %p9845_p3, %p9839_p0 }
  0x72   : > { %452 = vrot.lane.b32.xlu1 %v10039_v57, %s9925_s15  ;;  %444 = vrot.lane.b32.xlu0 %v10039_v57, %s9923_s13  ;;  %s458_s15 = sld [smem:[#allocation5]] }
  0xb0   : > { %v345_v26 = vpop.permute.xlu0 %344  ;;  %v326_v27 = vpop.permute.xlu1 %325 }
  0xb1   : > { %329 = vst.msk [vmem:[#allocation4] sm:$0x1] %vm328_vm3, %v326_v27 }
  0xb4   : > { %v361_v28 = vpop.permute.xlu0 %360  ;;  %v353_v29 = vpop.permute.xlu1 %352 }
  0xb8   : > { %v377_v30 = vpop.permute.xlu0 %376  ;;  %v369_v31 = vpop.permute.xlu1 %368 }
  0xbc   : > { %v385_v32 = vpop.permute.xlu1 %384  ;;  %v336_v33 = vpop.permute.xlu0 %335 }
  0xbd   : > { %338 = vst.msk [vmem:[#allocation4 + $0x1] sm:$0x1] %vm318_vm2, %v336_v33 }
  0xbe   : > { %339 = vst.msk [vmem:[#allocation4 + $0x1] sm:$0x1] %vm328_vm3, %v10029_v50 }
  0xc0   : > { %v399_v34 = vpop.permute.xlu1 %398  ;;  %v341_v35 = vpop.permute.xlu0 %340 }
  0xc1   : > { %401 = vst.msk [vmem:[#allocation4 + $0x8] sm:$0x1] %vm328_vm3, %v399_v34 }
  0xc2   : > { %343 = vst.msk [vmem:[#allocation4 + $0x2] sm:$0x1] %vm318_vm2, %v341_v35 }
  0xc3   : > { %347 = vst.msk [vmem:[#allocation4 + $0x2] sm:$0x1] %vm328_vm3, %v345_v26  ;;  %v2567_v26 = vand.u32 4294901760, %v7898_v18 }
  0xc4   : > { %v349_v36 = vpop.permute.xlu1 %348  ;;  %v365_v37 = vpop.permute.xlu0 %364 }
  0xc5   : > { %351 = vst.msk [vmem:[#allocation4 + $0x3] sm:$0x1] %vm318_vm2, %v349_v36  ;;  %367 = vst.msk [vmem:[#allocation4 + $0x5] sm:$0x1] %vm318_vm2, %v365_v37 }
  0xc6   : > { %355 = vst.msk [vmem:[#allocation4 + $0x3] sm:$0x1] %vm328_vm3, %v353_v29  ;;  %371 = vst.msk [vmem:[#allocation4 + $0x5] sm:$0x1] %vm328_vm3, %v369_v31  ;;  %v7899_v31 = vld [vmem:[%s10819_s3 + $0x50] sm:$0xff] }
  0xc8   : > { %v357_v38 = vpop.permute.xlu1 %356  ;;  %v381_v39 = vpop.permute.xlu0 %380 }
  0xc9   : > { %359 = vst.msk [vmem:[#allocation4 + $0x4] sm:$0x1] %vm318_vm2, %v357_v38  ;;  %383 = vst.msk [vmem:[#allocation4 + $0x7] sm:$0x1] %vm318_vm2, %v381_v39 }
  0xca   : > { %363 = vst.msk [vmem:[#allocation4 + $0x4] sm:$0x1] %vm328_vm3, %v361_v28  ;;  %387 = vst.msk [vmem:[#allocation4 + $0x7] sm:$0x1] %vm328_vm3, %v385_v32  ;;  %v7900_v32 = vld [vmem:[%s10819_s3 + $0x58] sm:$0xff] }
  0xcc   : > { %v373_v40 = vpop.permute.xlu1 %372  ;;  %v403_v41 = vpop.permute.xlu0 %402 }
  0xcd   : > { %375 = vst.msk [vmem:[#allocation4 + $0x6] sm:$0x1] %vm318_vm2, %v373_v40  ;;  %405 = vst.msk [vmem:[#allocation4 + $0x9] sm:$0x1] %vm318_vm2, %v403_v41  ;;  %v10259_v40 = vsub.f32 %v7898_v18, %v2567_v26 }
  0xce   : > { %379 = vst.msk [vmem:[#allocation4 + $0x6] sm:$0x1] %vm328_vm3, %v377_v30  ;;  %407 = vst.msk [vmem:[#allocation4 + $0x9] sm:$0x1] %vm328_vm3, %v10039_v57  ;;  %v1088_v30 = vsub.f32 %v10207_v14, %v1087_v19 }
  0xd0   : > { %v409_v42 = vpop.permute.xlu1 %408  ;;  %v417_v43 = vpop.permute.xlu0 %416 }
  0xd1   : > { %411 = vst.msk [vmem:[#allocation4 + $0xa] sm:$0x1] %vm318_vm2, %v409_v42  ;;  %419 = vst.msk [vmem:[#allocation4 + $0xb] sm:$0x1] %vm318_vm2, %v417_v43  ;;  %v2570_v42 = vand.u32 4294901760, %v7899_v31  ;;  %v2573_v43 = vand.u32 4294901760, %v7900_v32 }
  0xd3   : > { %v10291_v12 = vpack.c.bf16 %v2573_v43, %v2570_v42 }
  0xd4   : > { %v425_v44 = vpop.permute.xlu1 %424  ;;  %v433_v45 = vpop.permute.xlu0 %432 }
  0xd5   : > { %v456_v46 = vld [vmem:[#allocation4] sm:$0xff]  ;;  %427 = vst.msk [vmem:[#allocation4 + $0xc] sm:$0x1] %vm318_vm2, %v425_v44  ;;  %435 = vst.msk [vmem:[#allocation4 + $0xd] sm:$0x1] %vm318_vm2, %v433_v45  ;;  %v1089_v44 = vand.u32 4294901760, %v1088_v30 }
  0xd6   : > { %v466_v47 = vsel %vm464_vm4, %v456_v46, 0 }
  0xd7   : > { %v10122_v48 = vand.u32 4294901760, %v466_v47 }
  0xd8   : > { %v441_v49 = vpop.permute.xlu1 %440  ;;  %v449_v50 = vpop.permute.xlu0 %448 }
  0xd9   : > { %v10125_v51 = vsub.f32 %v466_v47, %v10122_v48  ;;  %443 = vst.msk [vmem:[#allocation4 + $0xe] sm:$0x1] %vm318_vm2, %v441_v49  ;;  %451 = vst.msk [vmem:[#allocation4 + $0xf] sm:$0x1] %vm318_vm2, %v449_v50 }
  0xdb   : > { %v10130_v52 = vand.u32 4294901760, %v10125_v51 }
  0xdc   : > { %v421_v53 = vpop.permute.xlu1 %420  ;;  %v413_v54 = vpop.permute.xlu0 %412 }
  0xdd   : > { %423 = vst.msk [vmem:[#allocation4 + $0xb] sm:$0x1] %vm328_vm3, %v421_v53  ;;  %415 = vst.msk [vmem:[#allocation4 + $0xa] sm:$0x1] %vm328_vm3, %v413_v54  ;;  %v543_v55 = vsub.f32 %v10125_v51, %v10130_v52  ;;  %v2662_v54 = vand.u32 4294901760, %v10259_v40 }
  0xdf   : > { %v10136_v56 = vand.u32 4294901760, %v543_v55  ;;  %v2663_v5 = vsub.f32 %v10259_v40, %v2662_v54 }
  0xe0   : > { %v437_v57 = vpop.permute.xlu1 %436  ;;  %v429_v58 = vpop.permute.xlu0 %428 }
  0xe1   : > { %439 = vst.msk [vmem:[#allocation4 + $0xd] sm:$0x1] %vm328_vm3, %v437_v57  ;;  %431 = vst.msk [vmem:[#allocation4 + $0xc] sm:$0x1] %vm328_vm3, %v429_v58  ;;  %8362 = vmatprep.mubr.f32.mxu0 %v10136_v56  ;;  %v10272_v58 = vsub.f32 %v7899_v31, %v2570_v42  ;;  %v2664_v11 = vand.u32 4294901760, %v2663_v5  ;;  %v7904_v42 = vld [vmem:[%s10819_s3 + $0x68] sm:$0xff] }
  0xe3   : > { %v2669_v6 = vand.u32 4294901760, %v10272_v58 }
  0xe4   : > { %v453_v59 = vpop.permute.xlu1 %452  ;;  %v445_v60 = vpop.permute.xlu0 %444 }
  0xe5   : > { %455 = vst.msk [vmem:[#allocation4 + $0xf] sm:$0x1] %vm328_vm3, %v453_v59  ;;  %447 = vst.msk [vmem:[#allocation4 + $0xe] sm:$0x1] %vm328_vm3, %v445_v60  ;;  %v10274_v59 = vsub.f32 %v7900_v32, %v2573_v43  ;;  %v3613_v43 = vand.u32 4294901760, %v7904_v42 }
  0xec   : > { %v457_v61 = vld [vmem:[#allocation4 + $0x8] sm:$0xff] }
  0xed   : > { %v469_v63 = vsel %vm464_vm4, %v457_v61, 0 }
  0xee   : > { %v10144_v0 = vand.u32 4294901760, %v469_v63 }
  0xf0   : > { %v10147_v1 = vsub.f32 %v469_v63, %v10144_v0 }
  0xf2   : > { %v10150_v2 = vand.u32 4294901760, %v10147_v1 }
  0xf4   : > { %v553_v3 = vsub.f32 %v10147_v1, %v10150_v2 }
  0xf6   : > { %v10154_v4 = vand.u32 4294901760, %v553_v3 }
  0xf8   : > { %8363 = vmatmul.mubr.f32.vlgmr.msra.gmra.mrb[0].mxu0 %v10154_v4 }
  0xf9   : > { %9121 = vmatpush3.bf16.msra.mxu0 %v10084_v16  ;;  %8373 = vmatprep.mubr.f32.mxu0 %v10122_v48  ;;  %v10217_v16 = vld [vmem:[%s10819_s3 + $0x28] sm:$0xff] }
  0xfa   : > { %9123 = vmatprep.subr.bf16.mxu0 %v10087_v21 }
  0xfd   : > { %9125 = vmatpush3.bf16.msra.mxu0 %v10087_v21  ;;  %v1521_v21 = vand.u32 4294901760, %v10217_v16 }
  0xfe   : > { %9127 = vmatprep.subr.bf16.mxu0 %v10089_v22 }
  0xff   : > { %v10251_v34 = vpack.c.bf16 %v1521_v21, %v1518_v20 }
 0x100   : > { %8374 = vmatmul.mubr.f32.vlgmr.msra.gmra.mrb[0].mxu0 %v10144_v0 }
 0x101   : > { %9129 = vmatpush3.bf16.msra.mxu0 %v10089_v22  ;;  %8384 = vmatprep.mubr.f32.mxu0 %v10125_v51 }
 0x102   : > { %9131 = vmatprep.subr.bf16.mxu0 %v10091_v23 }
 0x105   : > { %9133 = vmatpush3.bf16.msra.mxu0 %v10091_v23  ;;  %v10231_v23 = vld [vmem:[%s10819_s3 + $0x30] sm:$0xff] }
 0x106   : > { %9135 = vmatprep.subr.bf16.mxu0 %v10066_v62  ;;  %v1524_v35 = vand.u32 4294901760, %v10231_v23 }
 0x108   : > { %8385 = vmatmul.mubr.f32.vlgmr.msra.gmra.mrb[0].mxu0 %v10147_v1 }
 0x109   : > { %9137 = vmatpush3.bf16.msra.mxu0 %v10066_v62  ;;  %8395 = vmatprep.mubr.f32.mxu0 %v10130_v52 }
 0x10a   : > { %9139 = vmatprep.subr.bf16.mxu0 %v10080_v7 }
 0x10d   : > { %9141 = vmatpush3.bf16.msra.mxu0 %v10080_v7 }
 0x10e   : > { %9143 = vmatprep.subr.bf16.mxu0 %v10093_v24 }
 0x110   : > { %8396 = vmatmul.mubr.f32.vlgmr.msra.gmra.mrb[0].mxu0 %v10150_v2 }
 0x111   : > { %9145 = vmatpush3.bf16.msra.mxu0 %v10093_v24  ;;  %8406 = vmatprep.mubr.f32.mxu0 %v10122_v48  ;;  %v10236_v24 = vld [vmem:[%s10819_s3 + $0x38] sm:$0xff] }
 0x112   : > { %9147 = vmatprep.subr.bf16.mxu0 %v10095_v25  ;;  %v1527_v36 = vand.u32 4294901760, %v10236_v24 }
 0x114   : > { %v10267_v49 = vpack.c.bf16 %v1527_v36, %v1524_v35 }
 0x115   : > { %9149 = vmatpush3.bf16.msra.mxu0 %v10095_v25  ;;  %v2564_v25 = vand.u32 4294901760, %v7897_v17 }
 0x116   : > { %9151 = vmatprep.subr.bf16.mxu0 %v10066_v62 }
 0x117   : > { %v10257_v39 = vsub.f32 %v7897_v17, %v2564_v25  ;;  %v10279_v63 = vpack.c.bf16 %v2567_v26, %v2564_v25  ;;  %v2670_v17 = vsub.f32 %v10272_v58, %v2669_v6 }
 0x118   : > { %8407 = vmatmul.mubr.f32.vlgmr.msra.gmra.mrb[0].mxu0 %v10144_v0 }
 0x119   : > { %9153 = vmatpush3.bf16.msra.mxu0 %v10066_v62  ;;  %8417 = vmatprep.mubr.f32.mxu0 %v10122_v48  ;;  %v1077_v62 = vand.u32 4294901760, %v10193_v9  ;;  %v2655_v53 = vand.u32 4294901760, %v10257_v39  ;;  %v2671_v25 = vand.u32 4294901760, %v2670_v17  ;;  %v9270_v30 = vpack.c.bf16 %v10259_v40, %v10257_v39 }
 0x11a   : > { %9155 = vmatprep.subr.bf16.mxu0 %v10080_v7 }
 0x11b   : > { %v2656_v3 = vsub.f32 %v10257_v39, %v2655_v53 }
 0x11d   : > { %9157 = vmatpush3.bf16.msra.mxu0 %v10080_v7  ;;  %v1078_v7 = vsub.f32 %v10193_v9, %v1077_v62 }
 0x11f   : > { %v1079_v10 = vand.u32 4294901760, %v1078_v7  ;;  %v2676_v7 = vand.u32 4294901760, %v10274_v59 }
 0x120   : > { %8418 = vmatmul.mubr.f32.vlgmr.msra.gmra.mrb[0].mxu0 %v10144_v0 }
 0x121   : > { %8424 = vmatprep.mubr.f32.mxu0 %v1079_v10  ;;  %v2657_v10 = vand.u32 4294901760, %v2656_v3  ;;  %v2677_v18 = vsub.f32 %v10274_v59, %v2676_v7 }
 0x123   : > { %v2678_v26 = vand.u32 4294901760, %v2677_v18 }
 0x1f3   : > { %v8419_v22 = vpop.f32.mrb[0].mxu0 }
 0x1f4   : > { %v1012_v27 = vand.u32 4294901760, %v8419_v22  ;;  %v989_v28 = vpop.f32.mrb[1].mxu0 }
 0x1f5   : > { %v1009_v29 = vand.u32 4294901760, %v989_v28 }
 0x1f6   : > { %v1104_v33 = vsub.f32 %v8419_v22, %v1012_v27  ;;  %v9262_v22 = vpack.c.bf16 %v2664_v11, %v2657_v10 }
 0x1f7   : > { %v10255_v37 = vpack.c.bf16 %v1012_v27, %v1009_v29  ;;  %v1097_v38 = vsub.f32 %v989_v28, %v1009_v29  ;;  %v9266_v27 = vpack.c.bf16 %v2678_v26, %v2671_v25  ;;  %v10310_v28 = vsub.f32 %v10212_v15, %v1518_v20 }
 0x1f8   : > { %v1105_v41 = vand.u32 4294901760, %v1104_v33  ;;  %v10315_v29 = vsub.f32 %v10217_v16, %v1521_v21  ;;  %v9274_v20 = vpack.c.bf16 %v10274_v59, %v10272_v58 }
 0x1f9   : > { %9159 = vmatprep.subr.bf16.mxu0 %v10255_v37  ;;  %v1098_v45 = vand.u32 4294901760, %v1097_v38  ;;  %v9166_v46 = vpack.c.bf16 %v1104_v33, %v1097_v38  ;;  %v1609_v15 = vand.u32 4294901760, %v10310_v28 }
 0x1fa   : > { %9161 = vmatpush3.bf16.msra.mxu0 %v10255_v37  ;;  %v1106_v47 = vsub.f32 %v1104_v33, %v1105_v41  ;;  %v1616_v16 = vand.u32 4294901760, %v10315_v29 }
 0x1fb   : > { %9183 = vmatprep.subr.bf16.mxu0 %v10251_v34  ;;  %v1099_v50 = vsub.f32 %v1097_v38, %v1098_v45  ;;  %v9174_v55 = vpack.c.bf16 %v1105_v41, %v1098_v45  ;;  %v1610_v21 = vsub.f32 %v10310_v28, %v1609_v15  ;;  %v7906_v45 = vld [vmem:[%s10819_s3 + $0x78] sm:$0xff] }
 0x1fc   : > { %v1107_v57 = vand.u32 4294901760, %v1106_v47  ;;  %v1617_v31 = vsub.f32 %v10315_v29, %v1616_v16  ;;  %v3619_v47 = vand.u32 4294901760, %v7906_v45 }
 0x1fd   : > { %8425 = vmatmul.mubr.f32.vlgmr.msra.gmra.mrb[2].mxu0 %v1089_v44  ;;  %v1100_v60 = vand.u32 4294901760, %v1099_v50  ;;  %v7905_v44 = vld [vmem:[%s10819_s3 + $0x70] sm:$0xff] }
 0x1fe   : > { %9185 = vmatpush3.bf16.msra.mxu0 %v10251_v34  ;;  %8470 = vmatprep.mubr.f32.mxu0 %v10136_v56  ;;  %v1618_v32 = vand.u32 4294901760, %v1617_v31  ;;  %v10406_v59 = vsub.f32 %v7906_v45, %v3619_v47  ;;  %v7912_v31 = vld [vmem:[%s10819_s3 + $0x98] sm:$0xff] }
 0x1ff   : > { %v9162_v61 = vpack.c.bf16 %v1107_v57, %v1100_v60  ;;  %9187 = vmatprep.subr.bf16.mxu0 %v10267_v49 }
 0x201   : > { %9163 = vmatprep.subr.bf16.mxu1 %v9162_v61 }
 0x202   : > { %9165 = vmatpush3.bf16.msra.mxu1 %v9162_v61  ;;  %9189 = vmatpush3.bf16.msra.mxu0 %v10267_v49 }
 0x203   : > { %9167 = vmatprep.subr.bf16.mxu1 %v9166_v46  ;;  %9255 = vmatprep.subr.bf16.mxu0 %v10279_v63 }
 0x205   : > { %8432 = vmatmul.mubr.f32.vlgmr.msra.gmra.mrb[0].mxu1 %v10204_v13  ;;  %8471 = vmatmul.mubr.f32.vlgmr.msra.gmra.mrb[4].mxu0 %v10154_v4 }
 0x206   : > { %9169 = vmatpush3.bf16.msra.mxu1 %v9166_v46  ;;  %9257 = vmatpush3.bf16.msra.mxu0 %v10279_v63  ;;  %v3616_v46 = vand.u32 4294901760, %v7905_v44 }
 0x207   : > { %8578 = vmatprep.mubr.f32.mxu0 %v10136_v56  ;;  %9171 = vmatprep.subr.bf16.mxu1 %v10255_v37 }
 0x208   : > { %9259 = vmatprep.subr.bf16.mxu0 %v10291_v12  ;;  %8438 = vmatprep.mubr.f32.mxu1 %v10193_v9  ;;  %v10338_v9 = vsub.f32 %v10231_v23, %v1524_v35  ;;  %v1611_v23 = vand.u32 4294901760, %v1610_v21  ;;  %v10404_v58 = vsub.f32 %v7905_v44, %v3616_v46  ;;  %v7911_v21 = vld [vmem:[%s10819_s3 + $0x90] sm:$0xff] }
 0x20a   : > { %9261 = vmatpush3.bf16.msra.mxu0 %v10291_v12  ;;  %v1623_v33 = vand.u32 4294901760, %v10338_v9  ;;  %v3715_v5 = vand.u32 4294901760, %v10404_v58 }
 0x20b   : > { %9263 = vmatprep.subr.bf16.mxu0 %v9262_v22 }
 0x20c   : > { %v3716_v11 = vsub.f32 %v10404_v58, %v3715_v5 }
 0x20d   : > { %8439 = vmatmul.mubr.f32.vlgmr.msra.gmra.mrb[0].mxu1 %v10207_v14  ;;  %8579 = vmatmul.mubr.f32.vlgmr.msra.gmra.mrb[6].mxu0 %v10154_v4  ;;  %v9190_v14 = vpack.c.bf16 %v1618_v32, %v1611_v23 }
 0x20e   : > { %9173 = vmatpush3.bf16.msra.mxu1 %v10255_v37  ;;  %9265 = vmatpush3.bf16.msra.mxu0 %v9262_v22  ;;  %v3717_v22 = vand.u32 4294901760, %v3716_v11 }
 0x20f   : > { %9175 = vmatprep.subr.bf16.mxu1 %v9174_v55  ;;  %8589 = vmatprep.mubr.f32.mxu0 %v10122_v48 }
 0x210   : > { %9267 = vmatprep.subr.bf16.mxu0 %v9266_v27  ;;  %8445 = vmatprep.mubr.f32.mxu1 %v1077_v62  ;;  %v10343_v62 = vsub.f32 %v10236_v24, %v1527_v36  ;;  %v9286_v36 = vpack.c.bf16 %v2662_v54, %v2655_v53  ;;  %v10396_v53 = vsub.f32 %v7904_v42, %v3613_v43 }
 0x212   : > { %9269 = vmatpush3.bf16.msra.mxu0 %v9266_v27  ;;  %v1630_v24 = vand.u32 4294901760, %v10343_v62  ;;  %v9202_v54 = vpack.c.bf16 %v10343_v62, %v10338_v9  ;;  %v3708_v57 = vand.u32 4294901760, %v10396_v53 }
 0x213   : > { %9271 = vmatprep.subr.bf16.mxu0 %v9270_v30 }
 0x214   : > { %v1631_v35 = vsub.f32 %v10343_v62, %v1630_v24  ;;  %v3709_v3 = vsub.f32 %v10396_v53, %v3708_v57  ;;  %v9218_v26 = vpack.c.bf16 %v1630_v24, %v1623_v33  ;;  %v4665_v62 = vand.u32 4294901760, %v7912_v31 }
 0x215   : > { %8446 = vmatmul.mubr.f32.vlgmr.msra.gmra.mrb[0].mxu1 %v1087_v19  ;;  %8590 = vmatmul.mubr.f32.vlgmr.msra.gmra.mrb[6].mxu0 %v10144_v0  ;;  %v1624_v19 = vsub.f32 %v10338_v9, %v1623_v33  ;;  %v4662_v9 = vand.u32 4294901760, %v7911_v21 }
 0x216   : > { %9177 = vmatpush3.bf16.msra.mxu1 %v9174_v55  ;;  %9273 = vmatpush3.bf16.msra.mxu0 %v9270_v30  ;;  %v1632_v41 = vand.u32 4294901760, %v1631_v35  ;;  %v3710_v10 = vand.u32 4294901760, %v3709_v3  ;;  %v7910_v30 = vld [vmem:[%s10819_s3 + $0x88] sm:$0xff] }
 0x217   : > { %9179 = vmatprep.subr.bf16.mxu1 %v10255_v37  ;;  %8600 = vmatprep.mubr.f32.mxu0 %v10125_v51  ;;  %v1625_v38 = vand.u32 4294901760, %v1624_v19  ;;  %v4767_v19 = vsub.f32 %v7912_v31, %v4665_v62  ;;  %v10505_v42 = vpack.c.bf16 %v4665_v62, %v4662_v9 }
 0x218   : > { %9275 = vmatprep.subr.bf16.mxu0 %v9274_v20  ;;  %8452 = vmatprep.mubr.f32.mxu1 %v10190_v8 }
 0x219   : > { %v9194_v39 = vpack.c.bf16 %v1632_v41, %v1625_v38 }
 0x21a   : > { %9277 = vmatpush3.bf16.msra.mxu0 %v9274_v20  ;;  %v4659_v20 = vand.u32 4294901760, %v7910_v30 }
 0x21b   : > { %9279 = vmatprep.subr.bf16.mxu0 %v10279_v63 }
 0x21c   : > { %v4753_v32 = vsub.f32 %v7910_v30, %v4659_v20 }
 0x21d   : > { %8453 = vmatmul.mubr.f32.vlgmr.msra.gmra.mrb[0].mxu1 %v10204_v13  ;;  %8601 = vmatmul.mubr.f32.vlgmr.msra.gmra.mrb[6].mxu0 %v10147_v1 }
 0x21e   : > { %9181 = vmatpush3.bf16.msra.mxu1 %v10255_v37  ;;  %9281 = vmatpush3.bf16.msra.mxu0 %v10279_v63  ;;  %v7903_v37 = vld [vmem:[%s10819_s3 + $0x60] sm:$0xff]  ;;  %v4754_v24 = vand.u32 4294901760, %v4753_v32 }
 0x21f   : > { %8611 = vmatprep.mubr.f32.mxu0 %v10130_v52  ;;  %9283 = vmatprep.subr.bf16.mxu0 %v10291_v12  ;;  %v3610_v40 = vand.u32 4294901760, %v7903_v37 }
 0x220   : > { %8459 = vmatprep.mubr.f32.mxu1 %v10190_v8  ;;  %9191 = vmatprep.subr.bf16.mxu1 %v9190_v14  ;;  %v9290_v8 = vpack.c.bf16 %v2676_v7, %v2669_v6  ;;  %v3722_v6 = vand.u32 4294901760, %v10406_v59  ;;  %v4755_v38 = vsub.f32 %v4753_v32, %v4754_v24 }
 0x221   : > { %v10394_v50 = vsub.f32 %v7903_v37, %v3610_v40  ;;  %v10412_v60 = vpack.c.bf16 %v3613_v43, %v3610_v40  ;;  %v4768_v37 = vand.u32 4294901760, %v4767_v19 }
 0x222   : > { %9285 = vmatpush3.bf16.msra.mxu0 %v10291_v12  ;;  %v3723_v17 = vsub.f32 %v10406_v59, %v3722_v6 }
 0x223   : > { %9287 = vmatprep.subr.bf16.mxu0 %v9286_v36  ;;  %v3701_v55 = vand.u32 4294901760, %v10394_v50  ;;  %v4769_v43 = vsub.f32 %v4767_v19, %v4768_v37 }
 0x224   : > { %v3724_v25 = vand.u32 4294901760, %v3723_v17 }
 0x225   : > { %8460 = vmatmul.mubr.f32.vlgmr.msra.gmra.mrb[0].mxu1 %v10204_v13  ;;  %8612 = vmatmul.mubr.f32.vlgmr.msra.gmra.mrb[6].mxu0 %v10150_v2  ;;  %v9198_v13 = vpack.c.bf16 %v10315_v29, %v10310_v28  ;;  %v3702_v61 = vsub.f32 %v10394_v50, %v3701_v55  ;;  %v9342_v28 = vpack.c.bf16 %v10396_v53, %v10394_v50 }
 0x226   : > { %9193 = vmatpush3.bf16.msra.mxu1 %v9190_v14  ;;  %8481 = vmatprep.mubr.f32.mxu1 %v10122_v48  ;;  %v9338_v27 = vpack.c.bf16 %v3724_v25, %v3717_v22  ;;  %v9346_v29 = vpack.c.bf16 %v10406_v59, %v10404_v58  ;;  %v4760_v14 = vsub.f32 %v7911_v21, %v4662_v9  ;;  %v7895_v21 = vld [vmem:[%s10818_s2 + $0x10] sm:$0xff] }
 0x227   : > { %9289 = vmatpush3.bf16.msra.mxu0 %v9286_v36  ;;  %8622 = vmatprep.mubr.f32.mxu0 %v10122_v48  ;;  %v3703_v7 = vand.u32 4294901760, %v3702_v61  ;;  %v7924_v61 = vld [vmem:[%s10819_s3 + $0xd8] sm:$0xff]  ;;  %v2049_v9 = vsel %vm1001_vm5, %v7895_v21, 0 }
 0x228   : > { %9195 = vmatprep.subr.bf16.mxu1 %v9194_v39  ;;  %9291 = vmatprep.subr.bf16.mxu0 %v9290_v8  ;;  %v4761_v41 = vand.u32 4294901760, %v4760_v14  ;;  %v9418_v50 = vpack.c.bf16 %v4767_v19, %v4760_v14  ;;  %v10551_v62 = vand.u32 4294901760, %v2049_v9 }
 0x229   : > { %v9334_v18 = vpack.c.bf16 %v3710_v10, %v3703_v7 }
 0x22a   : > { %9197 = vmatpush3.bf16.msra.mxu1 %v9194_v39  ;;  %v4762_v40 = vsub.f32 %v4760_v14, %v4761_v41 }
 0x22b   : > { %9293 = vmatpush3.bf16.msra.mxu0 %v9290_v8  ;;  %9199 = vmatprep.subr.bf16.mxu1 %v9198_v13  ;;  %v4756_v8 = vand.u32 4294901760, %v4755_v38 }
 0x22c   : > { %9295 = vmatprep.subr.bf16.mxu0 %v10279_v63  ;;  %v4763_v45 = vand.u32 4294901760, %v4762_v40 }
 0x22d   : > { %8482 = vmatmul.mubr.f32.vlgmr.msra.gmra.mrb[2].mxu1 %v10144_v0 }
 0x22e   : > { %9201 = vmatpush3.bf16.msra.mxu1 %v9198_v13  ;;  %8492 = vmatprep.mubr.f32.mxu1 %v10125_v51  ;;  %v4770_v13 = vand.u32 4294901760, %v4769_v43 }
 0x22f   : > { %8623 = vmatmul.mubr.f32.vlgmr.msra.gmra.mrb[6].mxu0 %v10144_v0  ;;  %9203 = vmatprep.subr.bf16.mxu1 %v9202_v54 }
 0x230   : > { %9297 = vmatpush3.bf16.msra.mxu0 %v10279_v63  ;;  %8633 = vmatprep.mubr.f32.mxu0 %v10122_v48  ;;  %v10425_v63 = vpack.c.bf16 %v3619_v47, %v3616_v46  ;;  %v9410_v46 = vpack.c.bf16 %v4770_v13, %v4763_v45 }
 0x231   : > { %9299 = vmatprep.subr.bf16.mxu0 %v10291_v12 }
 0x232   : > { %9205 = vmatpush3.bf16.msra.mxu1 %v9202_v54  ;;  %v7921_v54 = vld [vmem:[%s10819_s3 + $0xc0] sm:$0xff] }
 0x233   : > { %9207 = vmatprep.subr.bf16.mxu1 %v10251_v34  ;;  %v6748_v58 = vand.u32 4294901760, %v7921_v54 }
 0x234   : > { %9301 = vmatpush3.bf16.msra.mxu0 %v10291_v12  ;;  %v9214_v12 = vpack.c.bf16 %v1616_v16, %v1609_v15  ;;  %v9362_v15 = vpack.c.bf16 %v3722_v6, %v3715_v5  ;;  %v6757_v5 = vand.u32 4294901760, %v7924_v61 }
 0x235   : > { %8493 = vmatmul.mubr.f32.vlgmr.msra.gmra.mrb[2].mxu1 %v10147_v1  ;;  %9327 = vmatprep.subr.bf16.mxu0 %v10412_v60  ;;  %v6838_v6 = vsub.f32 %v7921_v54, %v6748_v58  ;;  %v7896_v54 = vld [vmem:[%s10818_s2 + $0x18] sm:$0xff] }
 0x236   : > { %9209 = vmatpush3.bf16.msra.mxu1 %v10251_v34  ;;  %8503 = vmatprep.mubr.f32.mxu1 %v10130_v52  ;;  %v6859_v17 = vsub.f32 %v7924_v61, %v6757_v5 }
 0x237   : > { %8634 = vmatmul.mubr.f32.vlgmr.msra.gmra.mrb[6].mxu0 %v10144_v0  ;;  %9211 = vmatprep.subr.bf16.mxu1 %v10267_v49  ;;  %v6839_v7 = vand.u32 4294901760, %v6838_v6 }
 0x238   : > { %9329 = vmatpush3.bf16.msra.mxu0 %v10412_v60  ;;  %8686 = vmatprep.mubr.f32.mxu0 %v10136_v56 }
 0x239   : > { %9331 = vmatprep.subr.bf16.mxu0 %v10425_v63 }
 0x23a   : > { %9213 = vmatpush3.bf16.msra.mxu1 %v10267_v49 }
 0x23b   : > { %9215 = vmatprep.subr.bf16.mxu1 %v9214_v12 }
 0x23c   : > { %9333 = vmatpush3.bf16.msra.mxu0 %v10425_v63 }
 0x23d   : > { %8504 = vmatmul.mubr.f32.vlgmr.msra.gmra.mrb[2].mxu1 %v10150_v2  ;;  %9335 = vmatprep.subr.bf16.mxu0 %v9334_v18 }
 0x23e   : > { %9217 = vmatpush3.bf16.msra.mxu1 %v9214_v12  ;;  %8514 = vmatprep.mubr.f32.mxu1 %v10122_v48 }
 0x23f   : > { %8687 = vmatmul.mubr.f32.vlgmr.msra.gmra.mrb[8].mxu0 %v10154_v4  ;;  %9219 = vmatprep.subr.bf16.mxu1 %v9218_v26 }
 0x240   : > { %9337 = vmatpush3.bf16.msra.mxu0 %v9334_v18  ;;  %8697 = vmatprep.mubr.f32.mxu0 %v10122_v48  ;;  %v6840_v18 = vsub.f32 %v6838_v6, %v6839_v7 }
 0x241   : > { %9339 = vmatprep.subr.bf16.mxu0 %v9338_v27 }
 0x242   : > { %9221 = vmatpush3.bf16.msra.mxu1 %v9218_v26  ;;  %v6860_v26 = vand.u32 4294901760, %v6859_v17 }
 0x243   : > { %9223 = vmatprep.subr.bf16.mxu1 %v10251_v34 }
 0x244   : > { %9341 = vmatpush3.bf16.msra.mxu0 %v9338_v27 }
 0x245   : > { %8515 = vmatmul.mubr.f32.vlgmr.msra.gmra.mrb[2].mxu1 %v10144_v0  ;;  %9343 = vmatprep.subr.bf16.mxu0 %v9342_v28 }
 0x246   : > { %9225 = vmatpush3.bf16.msra.mxu1 %v10251_v34  ;;  %8525 = vmatprep.mubr.f32.mxu1 %v10122_v48  ;;  %v9358_v34 = vpack.c.bf16 %v3708_v57, %v3701_v55  ;;  %v7922_v55 = vld [vmem:[%s10819_s3 + $0xc8] sm:$0xff]  ;;  %v9434_v57 = vpack.c.bf16 %v4768_v37, %v4761_v41 }
 0x247   : > { %8698 = vmatmul.mubr.f32.vlgmr.msra.gmra.mrb[8].mxu0 %v10144_v0  ;;  %9227 = vmatprep.subr.bf16.mxu1 %v10267_v49  ;;  %v6751_v59 = vand.u32 4294901760, %v7922_v55 }
 0x248   : > { %9345 = vmatpush3.bf16.msra.mxu0 %v9342_v28  ;;  %8708 = vmatprep.mubr.f32.mxu0 %v10125_v51  ;;  %v6841_v28 = vand.u32 4294901760, %v6840_v18 }
 0x249   : > { %9347 = vmatprep.subr.bf16.mxu0 %v9346_v29  ;;  %v9542_v12 = vpack.c.bf16 %v6751_v59, %v6748_v58 }
 0x24a   : > { %9229 = vmatpush3.bf16.msra.mxu1 %v10267_v49  ;;  %v7909_v49 = vld [vmem:[%s10819_s3 + $0x80] sm:$0xff] }
 0x24b   : > { %v4656_v16 = vand.u32 4294901760, %v7909_v49 }
 0x24c   : > { %9349 = vmatpush3.bf16.msra.mxu0 %v9346_v29 }
 0x24d   : > { %8526 = vmatmul.mubr.f32.vlgmr.msra.gmra.mrb[2].mxu1 %v10144_v0  ;;  %9351 = vmatprep.subr.bf16.mxu0 %v10412_v60  ;;  %v4746_v23 = vsub.f32 %v7909_v49, %v4656_v16  ;;  %v10501_v35 = vpack.c.bf16 %v4659_v20, %v4656_v16  ;;  %v6861_v49 = vsub.f32 %v6859_v17, %v6860_v26 }
 0x24f   : > { %8709 = vmatmul.mubr.f32.vlgmr.msra.gmra.mrb[8].mxu0 %v10147_v1  ;;  %v4747_v33 = vand.u32 4294901760, %v4746_v23  ;;  %v9414_v47 = vpack.c.bf16 %v4753_v32, %v4746_v23  ;;  %v6862_v16 = vand.u32 4294901760, %v6861_v49 }
 0x250   : > { %9353 = vmatpush3.bf16.msra.mxu0 %v10412_v60  ;;  %8719 = vmatprep.mubr.f32.mxu0 %v10130_v52 }
 0x251   : > { %9355 = vmatprep.subr.bf16.mxu0 %v10425_v63  ;;  %v4748_v36 = vsub.f32 %v4746_v23, %v4747_v33  ;;  %v9430_v53 = vpack.c.bf16 %v4754_v24, %v4747_v33  ;;  %v10554_v23 = vsub.f32 %v2049_v9, %v10551_v62 }
 0x253   : > { %v4749_v39 = vand.u32 4294901760, %v4748_v36  ;;  %v2123_v33 = vand.u32 4294901760, %v10554_v23 }
 0x254   : > { %9357 = vmatpush3.bf16.msra.mxu0 %v10425_v63 }
 0x255   : > { %9359 = vmatprep.subr.bf16.mxu0 %v9358_v34  ;;  %v9406_v44 = vpack.c.bf16 %v4756_v8, %v4749_v39  ;;  %v2124_v24 = vsub.f32 %v10554_v23, %v2123_v33 }
 0x257   : > { %8720 = vmatmul.mubr.f32.vlgmr.msra.gmra.mrb[8].mxu0 %v10150_v2  ;;  %v2125_v14 = vand.u32 4294901760, %v2124_v24 }
 0x258   : > { %9361 = vmatpush3.bf16.msra.mxu0 %v9358_v34  ;;  %8730 = vmatprep.mubr.f32.mxu0 %v10122_v48 }
 0x259   : > { %9363 = vmatprep.subr.bf16.mxu0 %v9362_v15  ;;  %8532 = vmatprep.mubr.f32.mxu1 %v2125_v14 }
 0x25c   : > { %9365 = vmatpush3.bf16.msra.mxu0 %v9362_v15 }
 0x25d   : > { %9367 = vmatprep.subr.bf16.mxu0 %v10412_v60 }
 0x25f   : > { %8731 = vmatmul.mubr.f32.vlgmr.msra.gmra.mrb[8].mxu0 %v10144_v0 }
 0x260   : > { %9369 = vmatpush3.bf16.msra.mxu0 %v10412_v60  ;;  %8741 = vmatprep.mubr.f32.mxu0 %v10122_v48  ;;  %v7923_v60 = vld [vmem:[%s10819_s3 + $0xd0] sm:$0xff] }
 0x261   : > { %9371 = vmatprep.subr.bf16.mxu0 %v10425_v63  ;;  %v6754_v3 = vand.u32 4294901760, %v7923_v60 }
 0x263   : > { %v6852_v11 = vsub.f32 %v7923_v60, %v6754_v3  ;;  %v9546_v27 = vpack.c.bf16 %v6757_v5, %v6754_v3 }
 0x264   : > { %9373 = vmatpush3.bf16.msra.mxu0 %v10425_v63  ;;  %v6845_v63 = vsub.f32 %v7922_v55, %v6751_v59  ;;  %v2052_v59 = vsel %vm1001_vm5, %v7896_v54, 0 }
 0x265   : > { %9399 = vmatprep.subr.bf16.mxu0 %v10501_v35  ;;  %v6853_v25 = vand.u32 4294901760, %v6852_v11  ;;  %v9562_v32 = vpack.c.bf16 %v6859_v17, %v6852_v11  ;;  %v10585_v61 = vand.u32 4294901760, %v2052_v59 }
 0x266   : > { %v6846_v10 = vand.u32 4294901760, %v6845_v63  ;;  %v9558_v31 = vpack.c.bf16 %v6845_v63, %v6838_v6 }
 0x267   : > { %8742 = vmatmul.mubr.f32.vlgmr.msra.gmra.mrb[8].mxu0 %v10144_v0  ;;  %v6854_v34 = vsub.f32 %v6852_v11, %v6853_v25  ;;  %v2132_v3 = vsub.f32 %v2052_v59, %v10585_v61 }
 0x268   : > { %9401 = vmatpush3.bf16.msra.mxu0 %v10501_v35  ;;  %8794 = vmatprep.mubr.f32.mxu0 %v10136_v56  ;;  %v6847_v22 = vsub.f32 %v6845_v63, %v6846_v10  ;;  %v9574_v19 = vpack.c.bf16 %v6846_v10, %v6839_v7 }
 0x269   : > { %9403 = vmatprep.subr.bf16.mxu0 %v10505_v42  ;;  %v6855_v15 = vand.u32 4294901760, %v6854_v34  ;;  %v2133_v6 = vand.u32 4294901760, %v2132_v3 }
 0x26a   : > { %v6848_v29 = vand.u32 4294901760, %v6847_v22 }
 0x26b   : > { %v9554_v20 = vpack.c.bf16 %v6862_v16, %v6855_v15 }
 0x26c   : > { %9405 = vmatpush3.bf16.msra.mxu0 %v10505_v42  ;;  %v9550_v30 = vpack.c.bf16 %v6848_v29, %v6841_v28 }
 0x26d   : > { %9407 = vmatprep.subr.bf16.mxu0 %v9406_v44 }
 0x26f   : > { %8795 = vmatmul.mubr.f32.vlgmr.msra.gmra.mrb[10].mxu0 %v10154_v4 }
 0x270   : > { %9409 = vmatpush3.bf16.msra.mxu0 %v9406_v44  ;;  %8805 = vmatprep.mubr.f32.mxu0 %v10122_v48 }
 0x271   : > { %9411 = vmatprep.subr.bf16.mxu0 %v9410_v46 }
 0x274   : > { %9413 = vmatpush3.bf16.msra.mxu0 %v9410_v46 }
 0x275   : > { %9415 = vmatprep.subr.bf16.mxu0 %v9414_v47 }
 0x277   : > { %8806 = vmatmul.mubr.f32.vlgmr.msra.gmra.mrb[10].mxu0 %v10144_v0 }
 0x278   : > { %9417 = vmatpush3.bf16.msra.mxu0 %v9414_v47  ;;  %8816 = vmatprep.mubr.f32.mxu0 %v10125_v51 }
 0x279   : > { %9419 = vmatprep.subr.bf16.mxu0 %v9418_v50 }
 0x27c   : > { %9421 = vmatpush3.bf16.msra.mxu0 %v9418_v50 }
 0x27d   : > { %9423 = vmatprep.subr.bf16.mxu0 %v10501_v35 }
 0x27f   : > { %8817 = vmatmul.mubr.f32.vlgmr.msra.gmra.mrb[10].mxu0 %v10147_v1 }
 0x280   : > { %9425 = vmatpush3.bf16.msra.mxu0 %v10501_v35  ;;  %8827 = vmatprep.mubr.f32.mxu0 %v10130_v52 }
 0x281   : > { %9427 = vmatprep.subr.bf16.mxu0 %v10505_v42 }
 0x284   : > { %9429 = vmatpush3.bf16.msra.mxu0 %v10505_v42 }
 0x285   : > { %9431 = vmatprep.subr.bf16.mxu0 %v9430_v53 }
 0x287   : > { %8828 = vmatmul.mubr.f32.vlgmr.msra.gmra.mrb[10].mxu0 %v10150_v2 }
 0x288   : > { %9433 = vmatpush3.bf16.msra.mxu0 %v9430_v53  ;;  %8838 = vmatprep.mubr.f32.mxu0 %v10122_v48 }
 0x289   : > { %9435 = vmatprep.subr.bf16.mxu0 %v9434_v57 }
 0x28c   : > { %9437 = vmatpush3.bf16.msra.mxu0 %v9434_v57 }
 0x28d   : > { %9439 = vmatprep.subr.bf16.mxu0 %v10501_v35 }
 0x28f   : > { %8839 = vmatmul.mubr.f32.vlgmr.msra.gmra.mrb[10].mxu0 %v10144_v0 }
 0x290   : > { %9441 = vmatpush3.bf16.msra.mxu0 %v10501_v35  ;;  %8849 = vmatprep.mubr.f32.mxu0 %v10122_v48  ;;  %v9578_v35 = vpack.c.bf16 %v6860_v26, %v6853_v25 }
 0x291   : > { %9443 = vmatprep.subr.bf16.mxu0 %v10505_v42 }
 0x294   : > { %9445 = vmatpush3.bf16.msra.mxu0 %v10505_v42 }
 0x295   : > { %9543 = vmatprep.subr.bf16.mxu0 %v9542_v12 }
 0x297   : > { %8850 = vmatmul.mubr.f32.vlgmr.msra.gmra.mrb[10].mxu0 %v10144_v0 }
 0x298   : > { %9545 = vmatpush3.bf16.msra.mxu0 %v9542_v12  ;;  %9010 = vmatprep.mubr.f32.mxu0 %v10136_v56 }
 0x299   : > { %9547 = vmatprep.subr.bf16.mxu0 %v9546_v27 }
 0x29c   : > { %9549 = vmatpush3.bf16.msra.mxu0 %v9546_v27 }
 0x29d   : > { %9551 = vmatprep.subr.bf16.mxu0 %v9550_v30 }
 0x29f   : > { %9011 = vmatmul.mubr.f32.vlgmr.msra.gmra.mrb[12].mxu0 %v10154_v4 }
 0x2a0   : > { %9553 = vmatpush3.bf16.msra.mxu0 %v9550_v30  ;;  %9021 = vmatprep.mubr.f32.mxu0 %v10122_v48 }
 0x2a1   : > { %9555 = vmatprep.subr.bf16.mxu0 %v9554_v20 }
 0x2a4   : > { %9557 = vmatpush3.bf16.msra.mxu0 %v9554_v20 }
 0x2a5   : > { %9559 = vmatprep.subr.bf16.mxu0 %v9558_v31 }
 0x2a7   : > { %9022 = vmatmul.mubr.f32.vlgmr.msra.gmra.mrb[12].mxu0 %v10144_v0 }
 0x2a8   : > { %9561 = vmatpush3.bf16.msra.mxu0 %v9558_v31  ;;  %9032 = vmatprep.mubr.f32.mxu0 %v10125_v51 }
 0x2a9   : > { %9563 = vmatprep.subr.bf16.mxu0 %v9562_v32 }
 0x2ac   : > { %9565 = vmatpush3.bf16.msra.mxu0 %v9562_v32  ;;  %v7901_v32 = vld [vmem:[%s10818_s2 + $0x20] sm:$0xff] }
 0x2ad   : > { %9567 = vmatprep.subr.bf16.mxu0 %v9542_v12 }
 0x2af   : > { %9033 = vmatmul.mubr.f32.vlgmr.msra.gmra.mrb[12].mxu0 %v10147_v1 }
 0x2b0   : > { %9569 = vmatpush3.bf16.msra.mxu0 %v9542_v12  ;;  %9043 = vmatprep.mubr.f32.mxu0 %v10130_v52 }
 0x2b1   : > { %9571 = vmatprep.subr.bf16.mxu0 %v9546_v27 }
 0x2b4   : > { %9573 = vmatpush3.bf16.msra.mxu0 %v9546_v27 }
 0x2b5   : > { %9575 = vmatprep.subr.bf16.mxu0 %v9574_v19 }
 0x2b7   : > { %9044 = vmatmul.mubr.f32.vlgmr.msra.gmra.mrb[12].mxu0 %v10150_v2 }
 0x2b8   : > { %9577 = vmatpush3.bf16.msra.mxu0 %v9574_v19  ;;  %9054 = vmatprep.mubr.f32.mxu0 %v10122_v48 }
 0x2b9   : > { %9579 = vmatprep.subr.bf16.mxu0 %v9578_v35 }
 0x2bc   : > { %9581 = vmatpush3.bf16.msra.mxu0 %v9578_v35 }
 0x2bd   : > { %9583 = vmatprep.subr.bf16.mxu0 %v9542_v12 }
 0x2bf   : > { %9055 = vmatmul.mubr.f32.vlgmr.msra.gmra.mrb[12].mxu0 %v10144_v0 }
 0x2c0   : > { %9585 = vmatpush3.bf16.msra.mxu0 %v9542_v12  ;;  %9065 = vmatprep.mubr.f32.mxu0 %v10122_v48  ;;  %v2134_v12 = vsub.f32 %v2132_v3, %v2133_v6 }
 0x2c1   : > { %9587 = vmatprep.subr.bf16.mxu0 %v9546_v27 }
 0x2c2   : > { %v2135_v28 = vand.u32 4294901760, %v2134_v12 }
 0x2c4   : > { %9589 = vmatpush3.bf16.msra.mxu0 %v9546_v27 }
 0x2c7   : > { %9066 = vmatmul.mubr.f32.vlgmr.msra.gmra.mrb[12].mxu0 %v10144_v0 }
 0x2d0   : > { %v10569_v36 = vpop.f32.mrb[2].mxu0 }
 0x2d1   : > { %v10571_v38 = vpop.f32.mrb[3].mxu0 }
 0x2d8   : > { %v8472_v41 = vpop.f32.mrb[4].mxu0 }
 0x2d9   : > { %v1592_v37 = vpop.f32.mrb[5].mxu0 }
 0x30a   : > { %v8635_v42 = vpop.f32.mrb[6].mxu0 }
 0x30b   : > { %v3104_v39 = vand.u32 4294901760, %v8635_v42  ;;  %v3081_v8 = vpop.f32.mrb[7].mxu0 }
 0x30c   : > { %v3101_v40 = vand.u32 4294901760, %v3081_v8 }
 0x30d   : > { %v3196_v43 = vsub.f32 %v8635_v42, %v3104_v39 }
 0x30e   : > { %v10573_v44 = vpack.c.bf16 %v3104_v39, %v3101_v40  ;;  %v3189_v45 = vsub.f32 %v3081_v8, %v3101_v40 }
 0x30f   : > { %v3197_v13 = vand.u32 4294901760, %v3196_v43 }
 0x310   : > { %v3190_v46 = vand.u32 4294901760, %v3189_v45  ;;  %v10575_v47 = vpack.c.bf16 %v3196_v43, %v3189_v45 }
 0x311   : > { %v3198_v50 = vsub.f32 %v3196_v43, %v3197_v13 }
 0x312   : > { %v3191_v53 = vsub.f32 %v3189_v45, %v3190_v46  ;;  %v10580_v55 = vpack.c.bf16 %v3197_v13, %v3190_v46  ;;  %v7902_v45 = vld [vmem:[%s10818_s2 + $0x28] sm:$0xff] }
 0x313   : > { %v3199_v57 = vand.u32 4294901760, %v3198_v50  ;;  %v3098_v50 = vsel %vm1001_vm5, %v7902_v45, 0 }
 0x314   : > { %v3192_v58 = vand.u32 4294901760, %v3191_v53  ;;  %v10613_v54 = vand.u32 4294901760, %v3098_v50 }
 0x316   : > { %v10583_v60 = vpack.c.bf16 %v3199_v57, %v3192_v58  ;;  %v3178_v58 = vsub.f32 %v3098_v50, %v10613_v54 }
 0x320   : > { %v8527_v5 = vpop.f32.mrb[2].mxu1 }
 0x321   : > { %v9618_v63 = vadd.f32 %v8527_v5, %v8472_v41  ;;  %v2035_v7 = vpop.f32.mrb[3].mxu1  ;;  %v3095_v41 = vsel %vm1001_vm5, %v7901_v32, 0 }
 0x322   : > { %v9619_v10 = vadd.f32 %v2035_v7, %v1592_v37  ;;  %v10601_v40 = vand.u32 4294901760, %v3095_v41 }
 0x323   : > { %v2058_v11 = vand.u32 4294901760, %v9618_v63 }
 0x324   : > { %v2055_v17 = vand.u32 4294901760, %v9619_v10  ;;  %v3168_v46 = vsub.f32 %v3095_v41, %v10601_v40 }
 0x325   : > { %v2150_v18 = vsub.f32 %v9618_v63, %v2058_v11 }
 0x326   : > { %v9230_v22 = vpack.c.bf16 %v2058_v11, %v2055_v17  ;;  %v2143_v25 = vsub.f32 %v9619_v10, %v2055_v17  ;;  %v3169_v57 = vand.u32 4294901760, %v3168_v46  ;;  %v7907_v10 = vld [vmem:[%s10818_s2 + $0x30] sm:$0xff] }
 0x327   : > { %v2151_v26 = vand.u32 4294901760, %v2150_v18 }
 0x328   : > { %v2144_v27 = vand.u32 4294901760, %v2143_v25  ;;  %9231 = vmatprep.subr.bf16.mxu1 %v9230_v22  ;;  %v9238_v29 = vpack.c.bf16 %v2150_v18, %v2143_v25  ;;  %v3170_v59 = vsub.f32 %v3168_v46, %v3169_v57 }
 0x329   : > { %9233 = vmatpush3.bf16.msra.mxu1 %v9230_v22  ;;  %v2152_v34 = vsub.f32 %v2150_v18, %v2151_v26 }
 0x32a   : > { %v2145_v49 = vsub.f32 %v2143_v25, %v2144_v27  ;;  %v9246_v30 = vpack.c.bf16 %v2151_v26, %v2144_v27  ;;  %v3171_v5 = vand.u32 4294901760, %v3170_v59 }
 0x32b   : > { %v2153_v15 = vand.u32 4294901760, %v2152_v34 }
 0x32c   : > { %8533 = vmatmul.mubr.f32.vlgmr.msra.gmra.mrb[0].mxu1 %v2135_v28  ;;  %v2146_v16 = vand.u32 4294901760, %v2145_v49 }
 0x32d   : > { %8539 = vmatprep.mubr.f32.mxu1 %v10551_v62 }
 0x32e   : > { %v9234_v20 = vpack.c.bf16 %v2153_v15, %v2146_v16 }
 0x330   : > { %9235 = vmatprep.subr.bf16.mxu1 %v9234_v20 }
 0x331   : > { %9237 = vmatpush3.bf16.msra.mxu1 %v9234_v20 }
 0x332   : > { %9239 = vmatprep.subr.bf16.mxu1 %v9238_v29 }
 0x334   : > { %8540 = vmatmul.mubr.f32.vlgmr.msra.gmra.mrb[0].mxu1 %v10585_v61 }
 0x335   : > { %9241 = vmatpush3.bf16.msra.mxu1 %v9238_v29  ;;  %8546 = vmatprep.mubr.f32.mxu1 %v10554_v23  ;;  %v7908_v29 = vld [vmem:[%s10818_s2 + $0x38] sm:$0xff] }
 0x336   : > { %9243 = vmatprep.subr.bf16.mxu1 %v9230_v22  ;;  %v4144_v16 = vsel %vm1001_vm5, %v7908_v29, 0 }
 0x33a   : > { %v8743_v21 = vpop.f32.mrb[8].mxu0 }
 0x33b   : > { %v4150_v31 = vand.u32 4294901760, %v8743_v21  ;;  %v4127_v9 = vpop.f32.mrb[9].mxu0 }
 0x33c   : > { %v4147_v24 = vand.u32 4294901760, %v4127_v9  ;;  %8547 = vmatmul.mubr.f32.vlgmr.msra.gmra.mrb[0].mxu1 %v2132_v3  ;;  %v3179_v3 = vand.u32 4294901760, %v3178_v58 }
 0x33d   : > { %v4242_v14 = vsub.f32 %v8743_v21, %v4150_v31  ;;  %9245 = vmatpush3.bf16.msra.mxu1 %v9230_v22  ;;  %8553 = vmatprep.mubr.f32.mxu1 %v2123_v33  ;;  %v10652_v21 = vand.u32 4294901760, %v4144_v16 }
 0x33e   : > { %v10596_v19 = vpack.c.bf16 %v4150_v31, %v4147_v24  ;;  %v4235_v35 = vsub.f32 %v4127_v9, %v4147_v24  ;;  %9247 = vmatprep.subr.bf16.mxu1 %v9246_v30 }
 0x33f   : > { %v4243_v37 = vand.u32 4294901760, %v4242_v14  ;;  %v4224_v9 = vsub.f32 %v4144_v16, %v10652_v21 }
 0x340   : > { %v4236_v42 = vand.u32 4294901760, %v4235_v35  ;;  %v10599_v39 = vpack.c.bf16 %v4242_v14, %v4235_v35 }
 0x341   : > { %v4244_v8 = vsub.f32 %v4242_v14, %v4243_v37  ;;  %v4225_v32 = vand.u32 4294901760, %v4224_v9 }
 0x342   : > { %v4237_v43 = vsub.f32 %v4235_v35, %v4236_v42  ;;  %v10606_v23 = vpack.c.bf16 %v4243_v37, %v4236_v42  ;;  %v7913_v42 = vld [vmem:[%s10818_s2 + $0x40] sm:$0xff] }
 0x343   : > { %v4245_v33 = vand.u32 4294901760, %v4244_v8  ;;  %v4226_v14 = vsub.f32 %v4224_v9, %v4225_v32 }
 0x344   : > { %8554 = vmatmul.mubr.f32.vlgmr.msra.gmra.mrb[0].mxu1 %v2133_v6  ;;  %v4238_v13 = vand.u32 4294901760, %v4237_v43  ;;  %v3180_v6 = vsub.f32 %v3178_v58, %v3179_v3 }
 0x345   : > { %9249 = vmatpush3.bf16.msra.mxu1 %v9246_v30  ;;  %8560 = vmatprep.mubr.f32.mxu1 %v10551_v62  ;;  %v4227_v35 = vand.u32 4294901760, %v4226_v14 }
 0x346   : > { %9251 = vmatprep.subr.bf16.mxu1 %v9230_v22  ;;  %v10611_v53 = vpack.c.bf16 %v4245_v33, %v4238_v13  ;;  %v3181_v63 = vand.u32 4294901760, %v3180_v6 }
 0x34c   : > { %8561 = vmatmul.mubr.f32.vlgmr.msra.gmra.mrb[0].mxu1 %v10585_v61 }
 0x34d   : > { %9253 = vmatpush3.bf16.msra.mxu1 %v9230_v22  ;;  %8567 = vmatprep.mubr.f32.mxu1 %v10551_v62 }
 0x34e   : > { %9303 = vmatprep.subr.bf16.mxu1 %v10573_v44 }
 0x354   : > { %8568 = vmatmul.mubr.f32.vlgmr.msra.gmra.mrb[0].mxu1 %v10585_v61 }
 0x355   : > { %9305 = vmatpush3.bf16.msra.mxu1 %v10573_v44  ;;  %8640 = vmatprep.mubr.f32.mxu1 %v3171_v5 }
 0x356   : > { %9307 = vmatprep.subr.bf16.mxu1 %v10583_v60 }
 0x35c   : > { %8641 = vmatmul.mubr.f32.vlgmr.msra.gmra.mrb[0].mxu1 %v3181_v63 }
 0x35d   : > { %9309 = vmatpush3.bf16.msra.mxu1 %v10583_v60  ;;  %8647 = vmatprep.mubr.f32.mxu1 %v10601_v40 }
 0x35e   : > { %9311 = vmatprep.subr.bf16.mxu1 %v10575_v47 }
 0x364   : > { %8648 = vmatmul.mubr.f32.vlgmr.msra.gmra.mrb[0].mxu1 %v10613_v54 }
 0x365   : > { %9313 = vmatpush3.bf16.msra.mxu1 %v10575_v47  ;;  %8654 = vmatprep.mubr.f32.mxu1 %v3168_v46  ;;  %v4141_v47 = vsel %vm1001_vm5, %v7907_v10, 0 }
 0x366   : > { %9315 = vmatprep.subr.bf16.mxu1 %v10573_v44  ;;  %v10638_v27 = vand.u32 4294901760, %v4141_v47 }
 0x368   : > { %v4214_v15 = vsub.f32 %v4141_v47, %v10638_v27  ;;  %v7916_v47 = vld [vmem:[%s10819_s3 + $0xa8] sm:$0xff] }
 0x36a   : > { %v8851_v62 = vpop.f32.mrb[10].mxu0  ;;  %v4215_v31 = vand.u32 4294901760, %v4214_v15 }
 0x36b   : > { %v5196_v61 = vand.u32 4294901760, %v8851_v62  ;;  %v5173_v7 = vpop.f32.mrb[11].mxu0 }
 0x36c   : > { %v5193_v11 = vand.u32 4294901760, %v5173_v7  ;;  %8655 = vmatmul.mubr.f32.vlgmr.msra.gmra.mrb[0].mxu1 %v3178_v58 }
 0x36d   : > { %v5288_v60 = vsub.f32 %v8851_v62, %v5196_v61  ;;  %9317 = vmatpush3.bf16.msra.mxu1 %v10573_v44  ;;  %8661 = vmatprep.mubr.f32.mxu1 %v3169_v57  ;;  %v7914_v57 = vld [vmem:[%s10818_s2 + $0x48] sm:$0xff] }
 0x36e   : > { %v10632_v17 = vpack.c.bf16 %v5196_v61, %v5193_v11  ;;  %v5281_v12 = vsub.f32 %v5173_v7, %v5193_v11  ;;  %9319 = vmatprep.subr.bf16.mxu1 %v10580_v55  ;;  %v5190_v6 = vsel %vm1001_vm5, %v7914_v57, 0 }
 0x36f   : > { %v5289_v18 = vand.u32 4294901760, %v5288_v60  ;;  %v5269_v62 = vand.u32 4294901760, %v5190_v6 }
 0x370   : > { %v5282_v22 = vand.u32 4294901760, %v5281_v12  ;;  %v10636_v25 = vpack.c.bf16 %v5288_v60, %v5281_v12 }
 0x371   : > { %v5290_v26 = vsub.f32 %v5288_v60, %v5289_v18  ;;  %v5270_v7 = vsub.f32 %v5190_v6, %v5269_v62 }
 0x372   : > { %v5283_v28 = vsub.f32 %v5281_v12, %v5282_v22  ;;  %v10643_v34 = vpack.c.bf16 %v5289_v18, %v5282_v22  ;;  %v5705_v22 = vand.u32 4294901760, %v7916_v47 }
 0x373   : > { %v5291_v49 = vand.u32 4294901760, %v5290_v26  ;;  %v7918_v26 = vld [vmem:[%s10819_s3 + $0xb8] sm:$0xff] }
 0x374   : > { %8662 = vmatmul.mubr.f32.vlgmr.msra.gmra.mrb[0].mxu1 %v3179_v3  ;;  %v5284_v30 = vand.u32 4294901760, %v5283_v28  ;;  %v5711_v28 = vand.u32 4294901760, %v7918_v26 }
 0x375   : > { %9321 = vmatpush3.bf16.msra.mxu1 %v10580_v55  ;;  %8668 = vmatprep.mubr.f32.mxu1 %v10601_v40  ;;  %v4216_v55 = vsub.f32 %v4214_v15, %v4215_v31 }
 0x376   : > { %9323 = vmatprep.subr.bf16.mxu1 %v10573_v44  ;;  %v10650_v20 = vpack.c.bf16 %v5291_v49, %v5284_v30  ;;  %v5799_v49 = vsub.f32 %v7916_v47, %v5705_v22 }
 0x377   : > { %v4217_v24 = vand.u32 4294901760, %v4216_v55 }
 0x378   : > { %v5800_v16 = vand.u32 4294901760, %v5799_v49 }
 0x37c   : > { %8669 = vmatmul.mubr.f32.vlgmr.msra.gmra.mrb[0].mxu1 %v10613_v54 }
 0x37d   : > { %9325 = vmatpush3.bf16.msra.mxu1 %v10573_v44  ;;  %8675 = vmatprep.mubr.f32.mxu1 %v10601_v40 }
 0x37e   : > { %9375 = vmatprep.subr.bf16.mxu1 %v10596_v19 }
 0x384   : > { %8676 = vmatmul.mubr.f32.vlgmr.msra.gmra.mrb[0].mxu1 %v10613_v54 }
 0x385   : > { %9377 = vmatpush3.bf16.msra.mxu1 %v10596_v19  ;;  %8748 = vmatprep.mubr.f32.mxu1 %v4217_v24 }
 0x386   : > { %9379 = vmatprep.subr.bf16.mxu1 %v10611_v53 }
 0x38c   : > { %8749 = vmatmul.mubr.f32.vlgmr.msra.gmra.mrb[0].mxu1 %v4227_v35 }
 0x38d   : > { %9381 = vmatpush3.bf16.msra.mxu1 %v10611_v53  ;;  %8755 = vmatprep.mubr.f32.mxu1 %v10638_v27 }
 0x38e   : > { %9383 = vmatprep.subr.bf16.mxu1 %v10599_v39 }
 0x394   : > { %8756 = vmatmul.mubr.f32.vlgmr.msra.gmra.mrb[0].mxu1 %v10652_v21 }
 0x395   : > { %9385 = vmatpush3.bf16.msra.mxu1 %v10599_v39  ;;  %8762 = vmatprep.mubr.f32.mxu1 %v4214_v15  ;;  %v5187_v39 = vsel %vm1001_vm5, %v7913_v42, 0 }
 0x396   : > { %9387 = vmatprep.subr.bf16.mxu1 %v10596_v19  ;;  %v5259_v53 = vand.u32 4294901760, %v5187_v39 }
 0x398   : > { %v5260_v5 = vsub.f32 %v5187_v39, %v5259_v53 }
 0x39a   : > { %v9067_v44 = vpop.f32.mrb[12].mxu0  ;;  %v5261_v61 = vand.u32 4294901760, %v5260_v5 }
 0x39b   : > { %v7288_v41 = vand.u32 4294901760, %v9067_v44  ;;  %v7265_v37 = vpop.f32.mrb[13].mxu0 }
 0x39c   : > { %v7285_v8 = vand.u32 4294901760, %v7265_v37  ;;  %8763 = vmatmul.mubr.f32.vlgmr.msra.gmra.mrb[0].mxu1 %v4224_v9  ;;  %v5262_v10 = vsub.f32 %v5260_v5, %v5261_v61  ;;  %v5801_v9 = vsub.f32 %v5799_v49, %v5800_v16 }
 0x39d   : > { %v7380_v40 = vsub.f32 %v9067_v44, %v7288_v41  ;;  %9389 = vmatpush3.bf16.msra.mxu1 %v10596_v19  ;;  %8769 = vmatprep.mubr.f32.mxu1 %v4215_v31 }
 0x39e   : > { %v10672_v43 = vpack.c.bf16 %v7288_v41, %v7285_v8  ;;  %v7373_v45 = vsub.f32 %v7265_v37, %v7285_v8  ;;  %9391 = vmatprep.subr.bf16.mxu1 %v10606_v23  ;;  %v5263_v11 = vand.u32 4294901760, %v5262_v10  ;;  %v5802_v14 = vand.u32 4294901760, %v5801_v9 }
 0x39f   : > { %v7381_v33 = vand.u32 4294901760, %v7380_v40 }
 0x3a0   : > { %v7374_v13 = vand.u32 4294901760, %v7373_v45  ;;  %v10676_v46 = vpack.c.bf16 %v7380_v40, %v7373_v45 }
 0x3a1   : > { %v7382_v50 = vsub.f32 %v7380_v40, %v7381_v33 }
 0x3a2   : > { %v7375_v54 = vsub.f32 %v7373_v45, %v7374_v13  ;;  %v10681_v58 = vpack.c.bf16 %v7381_v33, %v7374_v13 }
 0x3a3   : > { %v7383_v59 = vand.u32 4294901760, %v7382_v50 }
 0x3a4   : > { %v7376_v3 = vand.u32 4294901760, %v7375_v54  ;;  %8770 = vmatmul.mubr.f32.vlgmr.msra.gmra.mrb[0].mxu1 %v4225_v32 }
 0x3a5   : > { %9393 = vmatpush3.bf16.msra.mxu1 %v10606_v23  ;;  %8776 = vmatprep.mubr.f32.mxu1 %v10638_v27  ;;  %v5271_v23 = vand.u32 4294901760, %v5270_v7 }
 0x3a6   : > { %9395 = vmatprep.subr.bf16.mxu1 %v10596_v19  ;;  %v10687_v63 = vpack.c.bf16 %v7383_v59, %v7376_v3 }
 0x3a7   : > { %v5272_v60 = vsub.f32 %v5270_v7, %v5271_v23 }
 0x3a9   : > { %v5273_v12 = vand.u32 4294901760, %v5272_v60 }
 0x3ac   : > { %8777 = vmatmul.mubr.f32.vlgmr.msra.gmra.mrb[0].mxu1 %v10652_v21 }
 0x3ad   : > { %9397 = vmatpush3.bf16.msra.mxu1 %v10596_v19  ;;  %8783 = vmatprep.mubr.f32.mxu1 %v10638_v27  ;;  %v7915_v19 = vld [vmem:[%s10819_s3 + $0xa0] sm:$0xff] }
 0x3ae   : > { %9447 = vmatprep.subr.bf16.mxu1 %v10632_v17  ;;  %v5702_v18 = vand.u32 4294901760, %v7915_v19 }
 0x3b0   : > { %v5792_v29 = vsub.f32 %v7915_v19, %v5702_v18  ;;  %v9470_v30 = vpack.c.bf16 %v5705_v22, %v5702_v18 }
 0x3b2   : > { %v5793_v15 = vand.u32 4294901760, %v5792_v29  ;;  %v9486_v8 = vpack.c.bf16 %v5799_v49, %v5792_v29 }
 0x3b4   : > { %8784 = vmatmul.mubr.f32.vlgmr.msra.gmra.mrb[0].mxu1 %v10652_v21  ;;  %v5813_v21 = vsub.f32 %v7918_v26, %v5711_v28  ;;  %v5794_v31 = vsub.f32 %v5792_v29, %v5793_v15 }
 0x3b5   : > { %9449 = vmatpush3.bf16.msra.mxu1 %v10632_v17  ;;  %8856 = vmatprep.mubr.f32.mxu1 %v5263_v11 }
 0x3b6   : > { %9451 = vmatprep.subr.bf16.mxu1 %v10650_v20  ;;  %v5814_v55 = vand.u32 4294901760, %v5813_v21  ;;  %v5795_v24 = vand.u32 4294901760, %v5794_v31 }
 0x3b8   : > { %v5815_v44 = vsub.f32 %v5813_v21, %v5814_v55  ;;  %v9478_v41 = vpack.c.bf16 %v5802_v14, %v5795_v24 }
 0x3ba   : > { %v5816_v42 = vand.u32 4294901760, %v5815_v44 }
 0x3bc   : > { %8857 = vmatmul.mubr.f32.vlgmr.msra.gmra.mrb[0].mxu1 %v5273_v12 }
 0x3bd   : > { %9453 = vmatpush3.bf16.msra.mxu1 %v10650_v20  ;;  %8863 = vmatprep.mubr.f32.mxu1 %v5259_v53 }
 0x3be   : > { %9455 = vmatprep.subr.bf16.mxu1 %v10636_v25 }
 0x3c4   : > { %8864 = vmatmul.mubr.f32.vlgmr.msra.gmra.mrb[0].mxu1 %v5269_v62 }
 0x3c5   : > { %9457 = vmatpush3.bf16.msra.mxu1 %v10636_v25  ;;  %8870 = vmatprep.mubr.f32.mxu1 %v5260_v5  ;;  %v7917_v25 = vld [vmem:[%s10819_s3 + $0xb0] sm:$0xff] }
 0x3c6   : > { %9459 = vmatprep.subr.bf16.mxu1 %v10632_v17  ;;  %v5708_v27 = vand.u32 4294901760, %v7917_v25 }
 0x3c8   : > { %v5806_v20 = vsub.f32 %v7917_v25, %v5708_v27  ;;  %v9474_v32 = vpack.c.bf16 %v5711_v28, %v5708_v27  ;;  %v7925_v25 = vld [vmem:[%s10818_s2 + $0x60] sm:$0xff]  ;;  %v7926_v28 = vld [vmem:[%s10818_s2 + $0x68] sm:$0xff] }
 0x3c9   : > { %v7279_v26 = vsel %vm1001_vm5, %v7925_v25, 0  ;;  %v7282_v49 = vsel %vm1001_vm5, %v7926_v28, 0 }
 0x3ca   : > { %v9490_v40 = vpack.c.bf16 %v5813_v21, %v5806_v20  ;;  %v7351_v27 = vand.u32 4294901760, %v7279_v26 }
 0x3cc   : > { %8871 = vmatmul.mubr.f32.vlgmr.msra.gmra.mrb[0].mxu1 %v5270_v7  ;;  %v7352_v29 = vsub.f32 %v7279_v26, %v7351_v27 }
 0x3cd   : > { %9461 = vmatpush3.bf16.msra.mxu1 %v10632_v17  ;;  %8877 = vmatprep.mubr.f32.mxu1 %v5261_v61 }
 0x3ce   : > { %9463 = vmatprep.subr.bf16.mxu1 %v10643_v34 }
 0x3d4   : > { %8878 = vmatmul.mubr.f32.vlgmr.msra.gmra.mrb[0].mxu1 %v5271_v23 }
 0x3d5   : > { %9465 = vmatpush3.bf16.msra.mxu1 %v10643_v34  ;;  %8884 = vmatprep.mubr.f32.mxu1 %v5259_v53  ;;  %v5807_v34 = vand.u32 4294901760, %v5806_v20 }
 0x3d6   : > { %9467 = vmatprep.subr.bf16.mxu1 %v10632_v17 }
 0x3d7   : > { %v5808_v35 = vsub.f32 %v5806_v20, %v5807_v34 }
 0x3d9   : > { %v5809_v37 = vand.u32 4294901760, %v5808_v35 }
 0x3dc   : > { %8885 = vmatmul.mubr.f32.vlgmr.msra.gmra.mrb[0].mxu1 %v5269_v62 }
 0x3dd   : > { %9469 = vmatpush3.bf16.msra.mxu1 %v10632_v17  ;;  %8891 = vmatprep.mubr.f32.mxu1 %v5259_v53  ;;  %v9482_v17 = vpack.c.bf16 %v5816_v42, %v5809_v37 }
 0x3de   : > { %9471 = vmatprep.subr.bf16.mxu1 %v9470_v30 }
 0x3e4   : > { %8892 = vmatmul.mubr.f32.vlgmr.msra.gmra.mrb[0].mxu1 %v5269_v62 }
 0x3e5   : > { %9473 = vmatpush3.bf16.msra.mxu1 %v9470_v30  ;;  %8902 = vmatprep.mubr.f32.mxu1 %v10136_v56  ;;  %v9502_v56 = vpack.c.bf16 %v5800_v16, %v5793_v15  ;;  %v7353_v15 = vand.u32 4294901760, %v7352_v29 }
 0x3e6   : > { %9475 = vmatprep.subr.bf16.mxu1 %v9474_v32 }
 0x3e7   : > { %v7354_v20 = vsub.f32 %v7352_v29, %v7353_v15 }
 0x3e9   : > { %9477 = vmatpush3.bf16.msra.mxu1 %v9474_v32  ;;  %v7355_v31 = vand.u32 4294901760, %v7354_v20 }
 0x3ea   : > { %9479 = vmatprep.subr.bf16.mxu1 %v9478_v41 }
 0x3ec   : > { %8903 = vmatmul.mubr.f32.vlgmr.msra.gmra.mrb[4].mxu1 %v10154_v4  ;;  %v9506_v4 = vpack.c.bf16 %v5814_v55, %v5807_v34 }
 0x3ed   : > { %9481 = vmatpush3.bf16.msra.mxu1 %v9478_v41  ;;  %8913 = vmatprep.mubr.f32.mxu1 %v10122_v48 }
 0x3ee   : > { %9483 = vmatprep.subr.bf16.mxu1 %v9482_v17 }
 0x3f1   : > { %9485 = vmatpush3.bf16.msra.mxu1 %v9482_v17 }
 0x3f2   : > { %9487 = vmatprep.subr.bf16.mxu1 %v9486_v8 }
 0x3f4   : > { %8914 = vmatmul.mubr.f32.vlgmr.msra.gmra.mrb[4].mxu1 %v10144_v0 }
 0x3f5   : > { %9489 = vmatpush3.bf16.msra.mxu1 %v9486_v8  ;;  %8924 = vmatprep.mubr.f32.mxu1 %v10125_v51  ;;  %v7919_v51 = vld [vmem:[%s10818_s2 + $0x50] sm:$0xff] }
 0x3f6   : > { %9491 = vmatprep.subr.bf16.mxu1 %v9490_v40 }
 0x3f9   : > { %9493 = vmatpush3.bf16.msra.mxu1 %v9490_v40 }
 0x3fa   : > { %9495 = vmatprep.subr.bf16.mxu1 %v9470_v30 }
 0x3fc   : > { %8925 = vmatmul.mubr.f32.vlgmr.msra.gmra.mrb[4].mxu1 %v10147_v1 }
 0x3fd   : > { %9497 = vmatpush3.bf16.msra.mxu1 %v9470_v30  ;;  %8935 = vmatprep.mubr.f32.mxu1 %v10130_v52  ;;  %v6233_v52 = vsel %vm1001_vm5, %v7919_v51, 0 }
 0x3fe   : > { %9499 = vmatprep.subr.bf16.mxu1 %v9474_v32  ;;  %v6305_v1 = vand.u32 4294901760, %v6233_v52 }
 0x401   : > { %9501 = vmatpush3.bf16.msra.mxu1 %v9474_v32 }
 0x402   : > { %9503 = vmatprep.subr.bf16.mxu1 %v9502_v56 }
 0x404   : > { %8936 = vmatmul.mubr.f32.vlgmr.msra.gmra.mrb[4].mxu1 %v10150_v2  ;;  %v6306_v2 = vsub.f32 %v6233_v52, %v6305_v1 }
 0x405   : > { %9505 = vmatpush3.bf16.msra.mxu1 %v9502_v56  ;;  %8946 = vmatprep.mubr.f32.mxu1 %v10122_v48 }
 0x406   : > { %9507 = vmatprep.subr.bf16.mxu1 %v9506_v4  ;;  %v6307_v45 = vand.u32 4294901760, %v6306_v2 }
 0x408   : > { %v6308_v39 = vsub.f32 %v6306_v2, %v6307_v45 }
 0x409   : > { %9509 = vmatpush3.bf16.msra.mxu1 %v9506_v4 }
 0x40a   : > { %9511 = vmatprep.subr.bf16.mxu1 %v9470_v30  ;;  %v6309_v33 = vand.u32 4294901760, %v6308_v39 }
 0x40c   : > { %8947 = vmatmul.mubr.f32.vlgmr.msra.gmra.mrb[4].mxu1 %v10144_v0 }
 0x40d   : > { %9513 = vmatpush3.bf16.msra.mxu1 %v9470_v30  ;;  %8957 = vmatprep.mubr.f32.mxu1 %v10122_v48  ;;  %v7920_v48 = vld [vmem:[%s10818_s2 + $0x58] sm:$0xff]  ;;  %v7361_v30 = vand.u32 4294901760, %v7282_v49 }
 0x40e   : > { %9515 = vmatprep.subr.bf16.mxu1 %v9474_v32  ;;  %v6236_v13 = vsel %vm1001_vm5, %v7920_v48, 0 }
 0x40f   : > { %v6315_v50 = vand.u32 4294901760, %v6236_v13  ;;  %v7362_v16 = vsub.f32 %v7282_v49, %v7361_v30 }
 0x411   : > { %9517 = vmatpush3.bf16.msra.mxu1 %v9474_v32  ;;  %v7363_v21 = vand.u32 4294901760, %v7362_v16 }
 0x413   : > { %v7364_v9 = vsub.f32 %v7362_v16, %v7363_v21 }
 0x414   : > { %8958 = vmatmul.mubr.f32.vlgmr.msra.gmra.mrb[4].mxu1 %v10144_v0  ;;  %v6316_v0 = vsub.f32 %v6236_v13, %v6315_v50 }
 0x415   : > { %8964 = vmatprep.mubr.f32.mxu1 %v6309_v33  ;;  %v7365_v34 = vand.u32 4294901760, %v7364_v9 }
 0x416   : > { %v6317_v53 = vand.u32 4294901760, %v6316_v0 }
 0x418   : > { %v6318_v5 = vsub.f32 %v6316_v0, %v6317_v53 }
 0x41a   : > { %v6319_v23 = vand.u32 4294901760, %v6318_v5 }
 0x4e7   : > { %v8959_v54 = vpop.f32.mrb[4].mxu1 }
 0x4e8   : > { %v6242_v57 = vand.u32 4294901760, %v8959_v54  ;;  %v6219_v59 = vpop.f32.mrb[5].mxu1 }
 0x4e9   : > { %v6239_v3 = vand.u32 4294901760, %v6219_v59 }
 0x4ea   : > { %v6334_v6 = vsub.f32 %v8959_v54, %v6242_v57 }
 0x4eb   : > { %v9518_v62 = vpack.c.bf16 %v6242_v57, %v6239_v3  ;;  %v6327_v61 = vsub.f32 %v6219_v59, %v6239_v3 }
 0x4ec   : > { %v6335_v7 = vand.u32 4294901760, %v6334_v6 }
 0x4ed   : > { %v6328_v10 = vand.u32 4294901760, %v6327_v61  ;;  %9519 = vmatprep.subr.bf16.mxu1 %v9518_v62  ;;  %v9526_v11 = vpack.c.bf16 %v6334_v6, %v6327_v61 }
 0x4ee   : > { %v6336_v60 = vsub.f32 %v6334_v6, %v6335_v7  ;;  %9521 = vmatpush3.bf16.msra.mxu1 %v9518_v62 }
 0x4ef   : > { %v6329_v12 = vsub.f32 %v6327_v61, %v6328_v10  ;;  %v9534_v19 = vpack.c.bf16 %v6335_v7, %v6328_v10 }
 0x4f0   : > { %v6337_v47 = vand.u32 4294901760, %v6336_v60 }
 0x4f1   : > { %8965 = vmatmul.mubr.f32.vlgmr.msra.gmra.mrb[0].mxu1 %v6319_v23  ;;  %v6330_v18 = vand.u32 4294901760, %v6329_v12 }
 0x4f2   : > { %8971 = vmatprep.mubr.f32.mxu1 %v6305_v1 }
 0x4f3   : > { %v9522_v22 = vpack.c.bf16 %v6337_v47, %v6330_v18 }
 0x4f5   : > { %9523 = vmatprep.subr.bf16.mxu1 %v9522_v22 }
 0x4f6   : > { %9525 = vmatpush3.bf16.msra.mxu1 %v9522_v22 }
 0x4f7   : > { %9527 = vmatprep.subr.bf16.mxu1 %v9526_v11 }
 0x4f9   : > { %8972 = vmatmul.mubr.f32.vlgmr.msra.gmra.mrb[0].mxu1 %v6315_v50 }
 0x4fa   : > { %9529 = vmatpush3.bf16.msra.mxu1 %v9526_v11  ;;  %8978 = vmatprep.mubr.f32.mxu1 %v6306_v2 }
 0x4fb   : > { %9531 = vmatprep.subr.bf16.mxu1 %v9518_v62 }
 0x501   : > { %8979 = vmatmul.mubr.f32.vlgmr.msra.gmra.mrb[0].mxu1 %v6316_v0 }
 0x502   : > { %9533 = vmatpush3.bf16.msra.mxu1 %v9518_v62  ;;  %8985 = vmatprep.mubr.f32.mxu1 %v6307_v45 }
 0x503   : > { %9535 = vmatprep.subr.bf16.mxu1 %v9534_v19 }
 0x509   : > { %8986 = vmatmul.mubr.f32.vlgmr.msra.gmra.mrb[0].mxu1 %v6317_v53 }
 0x50a   : > { %9537 = vmatpush3.bf16.msra.mxu1 %v9534_v19  ;;  %8992 = vmatprep.mubr.f32.mxu1 %v6305_v1 }
 0x50b   : > { %9539 = vmatprep.subr.bf16.mxu1 %v9518_v62 }
 0x511   : > { %8993 = vmatmul.mubr.f32.vlgmr.msra.gmra.mrb[0].mxu1 %v6315_v50 }
 0x512   : > { %9541 = vmatpush3.bf16.msra.mxu1 %v9518_v62  ;;  %8999 = vmatprep.mubr.f32.mxu1 %v6305_v1 }
 0x513   : > { %9591 = vmatprep.subr.bf16.mxu1 %v10672_v43 }
 0x519   : > { %9000 = vmatmul.mubr.f32.vlgmr.msra.gmra.mrb[0].mxu1 %v6315_v50 }
 0x51a   : > { %9593 = vmatpush3.bf16.msra.mxu1 %v10672_v43  ;;  %9072 = vmatprep.mubr.f32.mxu1 %v7355_v31 }
 0x51b   : > { %9595 = vmatprep.subr.bf16.mxu1 %v10687_v63 }
 0x521   : > { %9073 = vmatmul.mubr.f32.vlgmr.msra.gmra.mrb[0].mxu1 %v7365_v34 }
 0x522   : > { %9597 = vmatpush3.bf16.msra.mxu1 %v10687_v63  ;;  %9079 = vmatprep.mubr.f32.mxu1 %v7351_v27 }
 0x523   : > { %9599 = vmatprep.subr.bf16.mxu1 %v10676_v46 }
 0x529   : > { %9080 = vmatmul.mubr.f32.vlgmr.msra.gmra.mrb[0].mxu1 %v7361_v30 }
 0x52a   : > { %9601 = vmatpush3.bf16.msra.mxu1 %v10676_v46  ;;  %9086 = vmatprep.mubr.f32.mxu1 %v7352_v29  ;;  %v459_v46 = vstv %s458_s15 }
 0x52b   : > { %9603 = vmatprep.subr.bf16.mxu1 %v10672_v43  ;;  %v9614_v63 = vadd.f32 %v10569_v36, %v459_v46 }
 0x531   : > { %9087 = vmatmul.mubr.f32.vlgmr.msra.gmra.mrb[0].mxu1 %v7362_v16 }
 0x532   : > { %9605 = vmatpush3.bf16.msra.mxu1 %v10672_v43  ;;  %9093 = vmatprep.mubr.f32.mxu1 %v7353_v15 }
 0x533   : > { %9607 = vmatprep.subr.bf16.mxu1 %v10681_v58 }
 0x539   : > { %9094 = vmatmul.mubr.f32.vlgmr.msra.gmra.mrb[0].mxu1 %v7363_v21 }
 0x53a   : > { %9609 = vmatpush3.bf16.msra.mxu1 %v10681_v58  ;;  %9100 = vmatprep.mubr.f32.mxu1 %v7351_v27  ;;  %v9616_v58 = vadd.f32 %v10571_v38, %v459_v46 }
 0x53b   : > { %9611 = vmatprep.subr.bf16.mxu1 %v10672_v43 }
 0x541   : > { %9101 = vmatmul.mubr.f32.vlgmr.msra.gmra.mrb[0].mxu1 %v7361_v30 }
 0x542   : > { %9613 = vmatpush3.bf16.msra.mxu1 %v10672_v43  ;;  %9107 = vmatprep.mubr.f32.mxu1 %v7351_v27 }
 0x549   : > { %9108 = vmatmul.mubr.f32.vlgmr.msra.gmra.mrb[0].mxu1 %v7361_v30 }
 0x61c   : > { %v9109_v55 = vpop.f32.mrb[0].mxu1 }
 0x61d   : > { %v9615_v32 = vadd.f32 %v9614_v63, %v9109_v55  ;;  %v7776_v43 = vpop.f32.mrb[1].mxu1 }
 0x61e   : > { %v9617_v24 = vadd.f32 %v9616_v58, %v7776_v43 }
 0x61f   : > { %7789 = vst.msk [vmem:[%s213_s23 + $0x8] sm:$0xff] %vm1001_vm5, %v9615_v32 }
 0x620   : > { %7788 = vst.msk [vmem:[%s213_s23] sm:$0xff] %vm1001_vm5, %v9617_v24 }
 0x621   : > { %9849 = shalt.err (!%p9846_p5)
}
 0x622   : > { %s9850_s11 = scalar_lea.hbm %s10766_s6, 256  ;;  %s9854_s14 = scalar_lea.hbm %s10820_s4, 512 }
 0x623   : > { %p9851_p6 = scmp.ne.s32.totalorder %s10766_s6, %s9850_s11  ;;  %p9855_p10 = scmp.lt.u32.totalorder %s10766_s6, %s10820_s4 }
 0x624   : > { %p9856_p11 = scmp.lt.u32.totalorder %s9854_s14, %s9850_s11  ;;  %p9858_p13 = scmp.lt.u32.totalorder %s9850_s11, %s10766_s6 }
 0x625   : > { %p9852_p7 = pnand %p9851_p6, %p9997_p4 }
 0x626   : > { %p9857_p12 = por %p9856_p11, %p9855_p10 }
 0x627   : > { %p9853_p9 = pneg %p9852_p7 }
 0x628   : > { %p9859_p0 = por %p9858_p13, %p9857_p12 }
 0x62a   : > { %p9860_p1 = pnand %p9859_p0, %p9853_p9 }
 0x62c   : > { %9863 = shalt.err (!%p9860_p1)
}
 0x62d   : > { %s9927_s1 = smov 128   ;;  %s9928_s23 = smov 8  }
 0x62e   : > { %9768 = dma.vmem_to_hbm [thread:$0]  (%p9997_p4), %s10761_s25, 256, %s10766_s6, %s10770_s20, %s9927_s1, %s9927_s1, %s9928_s23  }
 0x62f PF: > { %p9774_p2 = scmp.ge.s32.totalorder %s9914_s22, 2  ;;  %s7819_s27 = sand.u32 1, %s9894_s17  }
 0x630   : > { %s7820_s30 = scalar_lea.sflag [#allocation7], %s7819_s27 }
 0x631   : > { %p9771_p3 = pnand %p9774_p2, %p10004_p8 }
 0x633   : > { %9889 = dma.done.wait (!%p9771_p3), %s7820_s30, 256  }
 0x634   : > { %9891 = vsyncadd (!%p9771_p3), %s7820_s30, 4294967040  ;;  %s18_s22 = sadd.s32 1, %s9914_s22   ;;  %s10825_s17 = smov %s9898_s18 }
 0x635   : > { %p15_p5 = scmp.ge.s32.totalorder %s18_s22, 4   ;;  %s10826_s18 = smov %s9902_s19 }
 0x636   : > { %s10827_s19 = smov %s10010_s29  ;;  %s10828_s20 = smov %s9910_s21 }
 0x637   : > { %s10829_s21 = smov %s10831_s24  ;;  %17 = sbr.rel (!%p15_p5) target bundleno = 6 (0x6), region = 91 }
 0x63e   :  { %7825 = vsyncpa [#allocation7], 1 }
 0x63f   :  { %7827 = vsyncpa [#allocation7 + $0x1], 1 }

</bundles_post_ra>
